<compile_context>
chip_gen: v5e
topology: v5e:2x2
jax: 0.10.0
libtpu: 0.0.40
codegen_flags: <defaults>
</compile_context>

<pallas_src>
import math
import functools

import jax
import jax.numpy as jnp
from jax.experimental import pallas as pl
from jax.experimental.pallas import tpu as pltpu

B_J0 = 0.01     # b_j0
R_M = 1.0       # R_m
DT = 1.0
BETA1 = 0.36    # isAdapt = 1
BETA2 = 1.8


def _rhythm_dexat_kernel(
    x_ref,                       # (T, Bc, IN)      f32   time-major input (batch chunk)
    wi1_ref,                     # (IN, r1)         bf16
    wbd_ref,                     # (r1+r2, r1+r2)   bf16  blockdiag(Wh1, Wh2)
    wi2_ref,                     # (r1, r2)         bf16
    wi3_ref,                     # (r2, r3)         bf16
    wo_ref,                      # (r3, OUT_PAD)    bf16
    bo_ref,                      # (1, OUT_PAD)     f32
    c1_ref, c2_ref, c3_ref,      # (6, r) f32: [alpha, ro1, ro2, b1*(1-ro1), b2*(1-ro2), bias]
    s1_ref, s2_ref, s3_ref,      # (Bc, r) f32 initial mem == spike states
    out_ref,                     # (Bc, OUT_PAD) or (T, Bc, OUT_PAD)
    spk2_stack,                  # VMEM scratch (T*Bc, r2) f32
    spk3_stack,                  # VMEM scratch (T*Bc, r3) f32
    *, time_window, bc, last_only,
):
    T, Bc = time_window, bc
    in_dim = x_ref.shape[2]
    r1 = s1_ref.shape[1]

    # Weights stay resident across the time loop (bf16 = MXU-native on all generations).
    Wbd, Wi2 = wbd_ref[...], wi2_ref[...]
    Wi3, Wo, Bo = wi3_ref[...], wo_ref[...], bo_ref[...]

    def unpack(c_ref):
        c = c_ref[...]
        # alpha, ro1, ro2, beta1*(1-ro1), beta2*(1-ro2), fused bias     (each (1, r))
        return c[0:1, :], c[1:2, :], c[2:3, :], c[3:4, :], c[4:5, :], c[5:6, :]

    a1, ro11, ro12, c11, c12, bf1 = unpack(c1_ref)
    a2, ro21, ro22, c21, c22, bf2 = unpack(c2_ref)
    a3, ro31, ro32, c31, c32, bi3 = unpack(c3_ref)

    # --- hoisted input projection for ALL timesteps: one big MXU matmul ---
    x2 = x_ref[...].reshape(T * Bc, in_dim).astype(jnp.bfloat16)
    xproj = jnp.dot(x2, wi1_ref[...], preferred_element_type=jnp.float32) + bf1   # (T*Bc, r1)

    # In the PyTorch module mem and spike start as the SAME random tensor.
    mem1 = s1_ref[...]; spk1 = s1_ref[...]
    mem2 = s2_ref[...]; spk2 = s2_ref[...]
    mem3 = s3_ref[...]; spk3 = s3_ref[...]

    # Carried SCALED adaptation state bb_i = beta_i * b_i (b1 starts 0, b2 starts b_j0).
    bb11 = jnp.zeros_like(mem1); bb12 = jnp.full_like(mem1, BETA2 * B_J0)
    bb21 = jnp.zeros_like(mem2); bb22 = jnp.full_like(mem2, BETA2 * B_J0)
    bb31 = jnp.zeros_like(mem3); bb32 = jnp.full_like(mem3, BETA2 * B_J0)

    def neuron(inp, mem, spk, bb1, bb2, alpha, ro1, ro2, cc1, cc2):
        """mem_update_adp_DEXAT (isAdapt=1) with loop-invariant constants pre-hoisted."""
        bb1 = ro1 * bb1 + cc1 * spk               # = beta1 * (ro1*b1 + (1-ro1)*spike)
        bb2 = ro2 * bb2 + cc2 * spk               # = beta2 * (ro2*b2 + (1-ro2)*spike)
        thr = B_J0 + bb1 + bb2                    # B
        mem = mem * alpha + R_M * inp - thr * spk * DT
        spk = (mem - thr > 0.0).astype(jnp.float32)   # ActFun_adp forward: gt(0).float()
        return mem, spk, bb1, bb2

    # Combined [spk1 | spk2] carried for the fused block-diag recurrent matmul.
    spk12 = jnp.concatenate([spk1, spk2], axis=1)                     # (Bc, r1+r2)

    # T is small & static -> fully unrolled Python loop (full LLO scheduler visibility).
    # TODO(synk): for long sequences switch to lax.fori_loop(unroll=4..8) or a
    # time-chunked grid carrying mem/spk/bb state in VMEM scratch (bounds VMEM on v7x).
    for t in range(T):
        # One fused block-diagonal recurrent matmul for layers 1 & 2.
        rec = jnp.dot(spk12.astype(jnp.bfloat16), Wbd,
                      preferred_element_type=jnp.float32)             # (Bc, r1+r2)

        h1_in = xproj[t * Bc:(t + 1) * Bc, :] + rec[:, :r1]
        mem1, spk1, bb11, bb12 = neuron(h1_in, mem1, spk1, bb11, bb12,
                                        a1, ro11, ro12, c11, c12)

        h2_in = (jnp.dot(spk1.astype(jnp.bfloat16), Wi2,
                         preferred_element_type=jnp.float32)
                 + rec[:, r1:] + bf2)
        mem2, spk2, bb21, bb22 = neuron(h2_in, mem2, spk2, bb21, bb22,
                                        a2, ro21, ro22, c21, c22)

        spk12 = jnp.concatenate([spk1, spk2], axis=1)
        spk2_stack[t * Bc:(t + 1) * Bc, :] = spk2                     # off-chain store

    # --- layer 3 + readout hoisted out of the recurrent loop (batched over all T) ---
    h3_all = (jnp.dot(spk2_stack[...].astype(jnp.bfloat16), Wi3,
                      preferred_element_type=jnp.float32) + bi3)      # (T*Bc, r3)

    for t in range(T):                                                # VPU-only scan
        h3_in = h3_all[t * Bc:(t + 1) * Bc, :]
        mem3, spk3, bb31, bb32 = neuron(h3_in, mem3, spk3, bb31, bb32,
                                        a3, ro31, ro32, c31, c32)
        if not last_only:
            spk3_stack[t * Bc:(t + 1) * Bc, :] = spk3

    def sigmoid(z):
        return 1.0 / (1.0 + jnp.exp(-z))

    if last_only:
        logits = jnp.dot(spk3.astype(jnp.bfloat16), Wo,
                         preferred_element_type=jnp.float32) + Bo     # (Bc, OUT_PAD)
        out_ref[...] = sigmoid(logits)
    else:
        logits = jnp.dot(spk3_stack[...].astype(jnp.bfloat16), Wo,
                         preferred_element_type=jnp.float32) + Bo     # (T*Bc, OUT_PAD)
        out_ref[...] = sigmoid(logits).reshape(T, Bc, out_ref.shape[-1])


def _round_up(x, m):
    return ((x + m - 1) // m) * m


def rhythm_dexat_forward(x_bct, params, init_states, task="duration", batch_chunks=1):
    """x_bct: (B, input_size, T) float32 — same layout as the PyTorch forward.

    batch_chunks: grid size over batch ("parallel"); use 2 on v7x to engage both
    TensorCores, keep 1 on single-TC v5e/v6e.
    """
    batch, in_dim, T = x_bct.shape
    r1 = params["wi1"].shape[1]
    r2 = params["wi2"].shape[1]
    r3 = params["wi3"].shape[1]
    out_dim = params["wo"].shape[1]
    out_pad = _round_up(out_dim, 128)            # lane-dense output width

    # Batch chunking, sublane aligned (multiple of 8); pad batch with zero rows.
    bc = _round_up(-(-batch // batch_chunks), 8)
    bp = bc * batch_chunks

    x_tbi = jnp.transpose(x_bct.astype(jnp.float32), (2, 0, 1))       # (T, B, IN)
    if bp != batch:
        x_tbi = jnp.pad(x_tbi, ((0, 0), (0, bp - batch), (0, 0)))

    def pad_state(s):
        s = s.astype(jnp.float32)
        return jnp.pad(s, ((0, bp - batch), (0, 0))) if bp != batch else s

    s1, s2, s3 = (pad_state(s) for s in init_states)

    # Wrapper-side hoists (pure XLA, outside the serial recurrence):
    #  exp() constants + fused betas + fused biases packed as (6, r) per layer.
    def pack_consts(ta1, ta2, tm, bias):
        alpha = jnp.exp(-DT / tm)
        ro1 = jnp.exp(-DT / ta1)
        ro2 = jnp.exp(-DT / ta2)
        return jnp.concatenate(
            [alpha, ro1, ro2, BETA1 * (1.0 - ro1), BETA2 * (1.0 - ro2), bias],
            axis=0).astype(jnp.float32)

    c1 = pack_consts(params["ta11"], params["ta12"], params["tm1"],
                     params["bi1"] + params["bh1"])
    c2 = pack_consts(params["ta21"], params["ta22"], params["tm2"],
                     params["bi2"] + params["bh2"])
    c3 = pack_consts(params["ta31"], params["ta32"], params["tm3"], params["bi3"])

    # Block-diagonal fused recurrent weight blockdiag(Wh1, Wh2).
    wbd = jnp.zeros((r1 + r2, r1 + r2), jnp.float32)
    wbd = wbd.at[:r1, :r1].set(params["wh1"]).at[r1:, r1:].set(params["wh2"])

    wo_pad = jnp.zeros((r3, out_pad), jnp.float32).at[:, :out_dim].set(params["wo"])
    bo_pad = jnp.zeros((1, out_pad), jnp.float32).at[:, :out_dim].set(params["bo"])

    # MXU operands in bf16 (spikes are exactly 0/1 -> lossless); VPU math stays f32.
    wi1 = params["wi1"].astype(jnp.bfloat16)
    wbd = wbd.astype(jnp.bfloat16)
    wi2 = params["wi2"].astype(jnp.bfloat16)
    wi3 = params["wi3"].astype(jnp.bfloat16)
    wo_pad = wo_pad.astype(jnp.bfloat16)

    last_only = task in ("duration", "interval")
    if last_only:
        out_shape = jax.ShapeDtypeStruct((bp, out_pad), jnp.float32)
        out_spec = pl.BlockSpec((bc, out_pad), lambda i: (i, 0))
    else:
        # TODO(synk): for very long T, pack T*out_dim into lanes of a (B, 128) buffer
        # to cut 'syn' writeback amplification; negligible at these sizes.
        out_shape = jax.ShapeDtypeStruct((T, bp, out_pad), jnp.float32)
        out_spec = pl.BlockSpec((T, bc, out_pad), lambda i: (0, i, 0))

    def const_spec(arr):
        nd = arr.ndim
        return pl.BlockSpec(arr.shape, lambda i, nd=nd: (0,) * nd)

    in_specs = [
        pl.BlockSpec((T, bc, in_dim), lambda i: (0, i, 0)),           # x (batch chunk)
        const_spec(wi1), const_spec(wbd), const_spec(wi2),
        const_spec(wi3), const_spec(wo_pad), const_spec(bo_pad),
        const_spec(c1), const_spec(c2), const_spec(c3),
        pl.BlockSpec((bc, r1), lambda i: (i, 0)),
        pl.BlockSpec((bc, r2), lambda i: (i, 0)),
        pl.BlockSpec((bc, r3), lambda i: (i, 0)),
    ]

    kernel = functools.partial(
        _rhythm_dexat_kernel, time_window=T, bc=bc, last_only=last_only)

    out = pl.pallas_call(
        kernel,
        out_shape=out_shape,
        grid_spec=pltpu.PrefetchScalarGridSpec(
            num_scalar_prefetch=0,
            grid=(batch_chunks,),
            in_specs=in_specs,
            out_specs=out_spec,
            scratch_shapes=[
                pltpu.VMEM((T * bc, r2), jnp.float32),   # spk2 trajectory
                pltpu.VMEM((T * bc, r3), jnp.float32),   # spk3 trajectory ('syn' path)
            ]),
        compiler_params=pltpu.CompilerParams(
            dimension_semantics=("parallel",),
            # Modest and v7x-safe (physical VMEM there is only 64 MiB).
            vmem_limit_bytes=32 * 1024 * 1024),
    )(x_tbi, wi1, wbd, wi2, wi3, wo_pad, bo_pad, c1, c2, c3, s1, s2, s3)

    if last_only:
        return out[:batch, :out_dim]                          # (B, OUT) == output[:, :, -1]
    return jnp.transpose(out[:, :batch, :out_dim], (1, 2, 0))  # (B, OUT, T) like stack(dim=2)


# ---------------- deterministic parameter construction (synthetic, no checkpoint) ----------------

def _xavier_uniform(key, fan_in, fan_out):
    lim = math.sqrt(6.0 / (fan_in + fan_out))
    return jax.random.uniform(key, (fan_in, fan_out), jnp.float32, -lim, lim)


def _orthogonal(key, n):
    a = jax.random.normal(key, (n, n), jnp.float32)
    q, r = jnp.linalg.qr(a)
    return q * jnp.sign(jnp.diag(r))[None, :]


def init_params(key, input_size, r1, r2, r3, out_size):
    ks = jax.random.split(key, 16)
    p = {}
    # Linear layers stored pre-transposed: y = x @ W + b
    p["wi1"] = _xavier_uniform(ks[0], input_size, r1); p["bi1"] = jnp.zeros((1, r1), jnp.float32)
    p["wh1"] = _orthogonal(ks[1], r1).T;               p["bh1"] = jnp.zeros((1, r1), jnp.float32)
    p["wi2"] = _xavier_uniform(ks[2], r1, r2);         p["bi2"] = jnp.zeros((1, r2), jnp.float32)
    p["wh2"] = _orthogonal(ks[3], r2).T;               p["bh2"] = jnp.zeros((1, r2), jnp.float32)
    p["wi3"] = _xavier_uniform(ks[4], r2, r3);         p["bi3"] = jnp.zeros((1, r3), jnp.float32)
    p["wo"]  = _xavier_uniform(ks[5], r3, out_size)
    p["bo"]  = jax.random.uniform(ks[6], (1, out_size), jnp.float32,
                                  -1.0 / math.sqrt(r3), 1.0 / math.sqrt(r3))
    # tau_adp ~ N(700, 25), tau_m ~ N(20, 5) (tau_m clamped away from zero for numerical safety)
    p["ta11"] = 700.0 + 25.0 * jax.random.normal(ks[7],  (1, r1), jnp.float32)
    p["ta12"] = 700.0 + 25.0 * jax.random.normal(ks[8],  (1, r1), jnp.float32)
    p["ta21"] = 700.0 + 25.0 * jax.random.normal(ks[9],  (1, r2), jnp.float32)
    p["ta22"] = 700.0 + 25.0 * jax.random.normal(ks[10], (1, r2), jnp.float32)
    p["ta31"] = 700.0 + 25.0 * jax.random.normal(ks[11], (1, r3), jnp.float32)
    p["ta32"] = 700.0 + 25.0 * jax.random.normal(ks[12], (1, r3), jnp.float32)
    p["tm1"]  = jnp.maximum(20.0 + 5.0 * jax.random.normal(ks[13], (1, r1), jnp.float32), 1.0)
    p["tm2"]  = jnp.maximum(20.0 + 5.0 * jax.random.normal(ks[14], (1, r2), jnp.float32), 1.0)
    p["tm3"]  = jnp.maximum(20.0 + 5.0 * jax.random.normal(ks[15], (1, r3), jnp.float32), 1.0)
    return p


# TODO(synk): the rhythmic masks built in __init__ (create_general_mask) are never used in
# the reference forward(), so they are not reproduced here.
# TODO(synk): the surrogate-gradient (ActFun_adp.backward / get_grads hooks) is backward-only
# and has no forward-pass Pallas equivalent; the forward uses the hard threshold gt(0).

if __name__ == "__main__":
    key = jax.random.PRNGKey(0)
    batch, input_size, time_window = 8, 8, 8
    hidden_dims = [32, 32, 32]
    output_size = 4

    k_x, k_p, k_s = jax.random.split(key, 3)
    x = jax.random.normal(k_x, (batch, input_size, time_window), jnp.float32)
    params = init_params(k_p, input_size, *hidden_dims, output_size)
    # In the PyTorch module the initial mem==spike states are torch.rand(...); here we draw
    # them deterministically and pass them in explicitly.
    state_keys = jax.random.split(k_s, 3)
    init_states = [jax.random.uniform(sk, (batch, h), jnp.float32)
                   for sk, h in zip(state_keys, hidden_dims)]

    # 'duration' path: only the last-timestep readout matmul + store is computed.
    fwd_dur = jax.jit(functools.partial(rhythm_dexat_forward, task="duration"))
    out = jax.block_until_ready(fwd_dur(x, params, init_states))
    assert out.shape == (batch, output_size), out.shape
    assert out.dtype == jnp.float32
    assert bool(jnp.all(jnp.isfinite(out)))
    assert bool(jnp.all((out >= 0.0) & (out <= 1.0)))   # sigmoid output range

    # 'syn' path: full (B, OUT, T) trajectory; its last step must match the 'duration' output.
    fwd_syn = jax.jit(functools.partial(rhythm_dexat_forward, task="syn"))
    out_syn = jax.block_until_ready(fwd_syn(x, params, init_states))
    assert out_syn.shape == (batch, output_size, time_window), out_syn.shape
    assert bool(jnp.all(jnp.isfinite(out_syn)))
    assert bool(jnp.all((out_syn >= 0.0) & (out_syn <= 1.0)))
    assert bool(jnp.allclose(out_syn[:, :, -1], out, atol=1e-5))

    print("KERNEL_OK")
</pallas_src>

<mosaic_0001>
module attributes {stable_mosaic.version = 11 : i64} {
  func.func @_rhythm_dexat_kernel(%arg0: i32, %arg1: memref<8x8x8xf32, #tpu.memory_space<vmem>>, %arg2: memref<8x32xbf16, #tpu.memory_space<vmem>>, %arg3: memref<64x64xbf16, #tpu.memory_space<vmem>>, %arg4: memref<32x32xbf16, #tpu.memory_space<vmem>>, %arg5: memref<32x32xbf16, #tpu.memory_space<vmem>>, %arg6: memref<32x128xbf16, #tpu.memory_space<vmem>>, %arg7: memref<1x128xf32, #tpu.memory_space<vmem>>, %arg8: memref<6x32xf32, #tpu.memory_space<vmem>>, %arg9: memref<6x32xf32, #tpu.memory_space<vmem>>, %arg10: memref<6x32xf32, #tpu.memory_space<vmem>>, %arg11: memref<8x32xf32, #tpu.memory_space<vmem>>, %arg12: memref<8x32xf32, #tpu.memory_space<vmem>>, %arg13: memref<8x32xf32, #tpu.memory_space<vmem>>, %arg14: memref<8x128xf32, #tpu.memory_space<vmem>>, %arg15: memref<64x32xf32, #tpu.memory_space<vmem>>, %arg16: memref<64x32xf32, #tpu.memory_space<vmem>>) attributes {dimension_semantics = [#tpu.dimension_semantics<parallel>], iteration_bounds = array<i64: 1>, scalar_prefetch = 0 : i64, scratch_operands = 2 : i64, tpu.core_type = #tpu.core_type<tc>, window_params = [{transform_indices = @transform_0, window_bounds = array<i64: 8, 8, 8>}, {pipeline_mode = #tpu.pipeline_mode<synchronous>, transform_indices = @transform_1, window_bounds = array<i64: 8, 32>}, {pipeline_mode = #tpu.pipeline_mode<synchronous>, transform_indices = @transform_2, window_bounds = array<i64: 64, 64>}, {pipeline_mode = #tpu.pipeline_mode<synchronous>, transform_indices = @transform_3, window_bounds = array<i64: 32, 32>}, {pipeline_mode = #tpu.pipeline_mode<synchronous>, transform_indices = @transform_4, window_bounds = array<i64: 32, 32>}, {pipeline_mode = #tpu.pipeline_mode<synchronous>, transform_indices = @transform_5, window_bounds = array<i64: 32, 128>}, {pipeline_mode = #tpu.pipeline_mode<synchronous>, transform_indices = @transform_6, window_bounds = array<i64: 1, 128>}, {pipeline_mode = #tpu.pipeline_mode<synchronous>, transform_indices = @transform_7, window_bounds = array<i64: 6, 32>}, {pipeline_mode = #tpu.pipeline_mode<synchronous>, transform_indices = @transform_8, window_bounds = array<i64: 6, 32>}, {pipeline_mode = #tpu.pipeline_mode<synchronous>, transform_indices = @transform_9, window_bounds = array<i64: 6, 32>}, {transform_indices = @transform_10, window_bounds = array<i64: 8, 32>}, {transform_indices = @transform_11, window_bounds = array<i64: 8, 32>}, {transform_indices = @transform_12, window_bounds = array<i64: 8, 32>}, {transform_indices = @transform_13, window_bounds = array<i64: 8, 128>}]} {
    %c0 = arith.constant 0 : index
    %c0_0 = arith.constant 0 : index
    %0 = vector.load %arg3[%c0, %c0_0] : memref<64x64xbf16, #tpu.memory_space<vmem>>, vector<64x64xbf16>
    %c0_1 = arith.constant 0 : index
    %c0_2 = arith.constant 0 : index
    %1 = vector.load %arg4[%c0_1, %c0_2] : memref<32x32xbf16, #tpu.memory_space<vmem>>, vector<32x32xbf16>
    %c0_3 = arith.constant 0 : index
    %c0_4 = arith.constant 0 : index
    %2 = vector.load %arg5[%c0_3, %c0_4] : memref<32x32xbf16, #tpu.memory_space<vmem>>, vector<32x32xbf16>
    %c0_5 = arith.constant 0 : index
    %c0_6 = arith.constant 0 : index
    %3 = vector.load %arg6[%c0_5, %c0_6] : memref<32x128xbf16, #tpu.memory_space<vmem>>, vector<32x128xbf16>
    %c0_7 = arith.constant 0 : index
    %c0_8 = arith.constant 0 : index
    %4 = vector.load %arg7[%c0_7, %c0_8] : memref<1x128xf32, #tpu.memory_space<vmem>>, vector<1x128xf32>
    %c0_9 = arith.constant 0 : index
    %c0_10 = arith.constant 0 : index
    %5 = vector.load %arg8[%c0_9, %c0_10] : memref<6x32xf32, #tpu.memory_space<vmem>>, vector<6x32xf32>
    %6 = vector.extract_strided_slice %5 {offsets = [0, 0], sizes = [1, 32], strides = [1, 1]} : vector<6x32xf32> to vector<1x32xf32>
    %7 = vector.extract_strided_slice %5 {offsets = [1, 0], sizes = [1, 32], strides = [1, 1]} : vector<6x32xf32> to vector<1x32xf32>
    %8 = vector.extract_strided_slice %5 {offsets = [2, 0], sizes = [1, 32], strides = [1, 1]} : vector<6x32xf32> to vector<1x32xf32>
    %9 = vector.extract_strided_slice %5 {offsets = [3, 0], sizes = [1, 32], strides = [1, 1]} : vector<6x32xf32> to vector<1x32xf32>
    %10 = vector.extract_strided_slice %5 {offsets = [4, 0], sizes = [1, 32], strides = [1, 1]} : vector<6x32xf32> to vector<1x32xf32>
    %11 = vector.extract_strided_slice %5 {offsets = [5, 0], sizes = [1, 32], strides = [1, 1]} : vector<6x32xf32> to vector<1x32xf32>
    %c0_11 = arith.constant 0 : index
    %c0_12 = arith.constant 0 : index
    %12 = vector.load %arg9[%c0_11, %c0_12] : memref<6x32xf32, #tpu.memory_space<vmem>>, vector<6x32xf32>
    %13 = vector.extract_strided_slice %12 {offsets = [0, 0], sizes = [1, 32], strides = [1, 1]} : vector<6x32xf32> to vector<1x32xf32>
    %14 = vector.extract_strided_slice %12 {offsets = [1, 0], sizes = [1, 32], strides = [1, 1]} : vector<6x32xf32> to vector<1x32xf32>
    %15 = vector.extract_strided_slice %12 {offsets = [2, 0], sizes = [1, 32], strides = [1, 1]} : vector<6x32xf32> to vector<1x32xf32>
    %16 = vector.extract_strided_slice %12 {offsets = [3, 0], sizes = [1, 32], strides = [1, 1]} : vector<6x32xf32> to vector<1x32xf32>
    %17 = vector.extract_strided_slice %12 {offsets = [4, 0], sizes = [1, 32], strides = [1, 1]} : vector<6x32xf32> to vector<1x32xf32>
    %18 = vector.extract_strided_slice %12 {offsets = [5, 0], sizes = [1, 32], strides = [1, 1]} : vector<6x32xf32> to vector<1x32xf32>
    %c0_13 = arith.constant 0 : index
    %c0_14 = arith.constant 0 : index
    %19 = vector.load %arg10[%c0_13, %c0_14] : memref<6x32xf32, #tpu.memory_space<vmem>>, vector<6x32xf32>
    %20 = vector.extract_strided_slice %19 {offsets = [0, 0], sizes = [1, 32], strides = [1, 1]} : vector<6x32xf32> to vector<1x32xf32>
    %21 = vector.extract_strided_slice %19 {offsets = [1, 0], sizes = [1, 32], strides = [1, 1]} : vector<6x32xf32> to vector<1x32xf32>
    %22 = vector.extract_strided_slice %19 {offsets = [2, 0], sizes = [1, 32], strides = [1, 1]} : vector<6x32xf32> to vector<1x32xf32>
    %23 = vector.extract_strided_slice %19 {offsets = [3, 0], sizes = [1, 32], strides = [1, 1]} : vector<6x32xf32> to vector<1x32xf32>
    %24 = vector.extract_strided_slice %19 {offsets = [4, 0], sizes = [1, 32], strides = [1, 1]} : vector<6x32xf32> to vector<1x32xf32>
    %25 = vector.extract_strided_slice %19 {offsets = [5, 0], sizes = [1, 32], strides = [1, 1]} : vector<6x32xf32> to vector<1x32xf32>
    %c0_15 = arith.constant 0 : index
    %c0_16 = arith.constant 0 : index
    %c0_17 = arith.constant 0 : index
    %26 = vector.load %arg1[%c0_15, %c0_16, %c0_17] : memref<8x8x8xf32, #tpu.memory_space<vmem>>, vector<8x8x8xf32>
    %27 = vector.shape_cast %26 : vector<8x8x8xf32> to vector<64x8xf32>
    %28 = arith.truncf %27 : vector<64x8xf32> to vector<64x8xbf16>
    %c0_18 = arith.constant 0 : index
    %c0_19 = arith.constant 0 : index
    %29 = vector.load %arg2[%c0_18, %c0_19] : memref<8x32xbf16, #tpu.memory_space<vmem>>, vector<8x32xbf16>
    %cst = arith.constant dense<0.000000e+00> : vector<64x32xf32>
    %30 = tpu.matmul %28, %29, %cst {dimension_numbers = #tpu.dot_dimension_numbers<[1], [0], [0], [1], [0, 0, 1, 1], [], []>} : vector<64x8xbf16>, vector<8x32xbf16>, vector<64x32xf32> -> vector<64x32xf32>
    %31 = vector.broadcast %11 : vector<1x32xf32> to vector<64x32xf32>
    %32 = arith.addf %30, %31 : vector<64x32xf32>
    %c0_20 = arith.constant 0 : index
    %c0_21 = arith.constant 0 : index
    %33 = vector.load %arg11[%c0_20, %c0_21] : memref<8x32xf32, #tpu.memory_space<vmem>>, vector<8x32xf32>
    %c0_22 = arith.constant 0 : index
    %c0_23 = arith.constant 0 : index
    %34 = vector.load %arg11[%c0_22, %c0_23] : memref<8x32xf32, #tpu.memory_space<vmem>>, vector<8x32xf32>
    %c0_24 = arith.constant 0 : index
    %c0_25 = arith.constant 0 : index
    %35 = vector.load %arg12[%c0_24, %c0_25] : memref<8x32xf32, #tpu.memory_space<vmem>>, vector<8x32xf32>
    %c0_26 = arith.constant 0 : index
    %c0_27 = arith.constant 0 : index
    %36 = vector.load %arg12[%c0_26, %c0_27] : memref<8x32xf32, #tpu.memory_space<vmem>>, vector<8x32xf32>
    %c0_28 = arith.constant 0 : index
    %c0_29 = arith.constant 0 : index
    %37 = vector.load %arg13[%c0_28, %c0_29] : memref<8x32xf32, #tpu.memory_space<vmem>>, vector<8x32xf32>
    %c0_30 = arith.constant 0 : index
    %c0_31 = arith.constant 0 : index
    %38 = vector.load %arg13[%c0_30, %c0_31] : memref<8x32xf32, #tpu.memory_space<vmem>>, vector<8x32xf32>
    %cst_32 = arith.constant 0.000000e+00 : f32
    %39 = vector.broadcast %cst_32 : f32 to vector<8x32xf32>
    %cst_33 = arith.constant 1.800000e-02 : f32
    %40 = vector.broadcast %cst_33 : f32 to vector<8x32xf32>
    %cst_34 = arith.constant 0.000000e+00 : f32
    %41 = vector.broadcast %cst_34 : f32 to vector<8x32xf32>
    %cst_35 = arith.constant 1.800000e-02 : f32
    %42 = vector.broadcast %cst_35 : f32 to vector<8x32xf32>
    %cst_36 = arith.constant 0.000000e+00 : f32
    %43 = vector.broadcast %cst_36 : f32 to vector<8x32xf32>
    %cst_37 = arith.constant 1.800000e-02 : f32
    %44 = vector.broadcast %cst_37 : f32 to vector<8x32xf32>
    %45 = tpu.concatenate %34, %36 in 1 : vector<8x32xf32>, vector<8x32xf32> -> vector<8x64xf32>
    %46 = arith.truncf %45 : vector<8x64xf32> to vector<8x64xbf16>
    %cst_38 = arith.constant dense<0.000000e+00> : vector<8x64xf32>
    %47 = tpu.matmul %46, %0, %cst_38 {dimension_numbers = #tpu.dot_dimension_numbers<[1], [0], [0], [1], [0, 0, 1, 1], [], []>} : vector<8x64xbf16>, vector<64x64xbf16>, vector<8x64xf32> -> vector<8x64xf32>
    %48 = vector.extract_strided_slice %32 {offsets = [0, 0], sizes = [8, 32], strides = [1, 1]} : vector<64x32xf32> to vector<8x32xf32>
    %49 = vector.extract_strided_slice %47 {offsets = [0, 0], sizes = [8, 32], strides = [1, 1]} : vector<8x64xf32> to vector<8x32xf32>
    %50 = arith.addf %48, %49 : vector<8x32xf32>
    %51 = vector.broadcast %7 : vector<1x32xf32> to vector<8x32xf32>
    %52 = arith.mulf %51, %39 : vector<8x32xf32>
    %53 = vector.broadcast %9 : vector<1x32xf32> to vector<8x32xf32>
    %54 = arith.mulf %53, %34 : vector<8x32xf32>
    %55 = arith.addf %52, %54 : vector<8x32xf32>
    %56 = vector.broadcast %8 : vector<1x32xf32> to vector<8x32xf32>
    %57 = arith.mulf %56, %40 : vector<8x32xf32>
    %58 = vector.broadcast %10 : vector<1x32xf32> to vector<8x32xf32>
    %59 = arith.mulf %58, %34 : vector<8x32xf32>
    %60 = arith.addf %57, %59 : vector<8x32xf32>
    %cst_39 = arith.constant 0.00999999977 : f32
    %61 = vector.broadcast %cst_39 : f32 to vector<8x32xf32>
    %62 = arith.addf %61, %55 : vector<8x32xf32>
    %63 = arith.addf %62, %60 : vector<8x32xf32>
    %64 = vector.broadcast %6 : vector<1x32xf32> to vector<8x32xf32>
    %65 = arith.mulf %33, %64 : vector<8x32xf32>
    %cst_40 = arith.constant 1.000000e+00 : f32
    %66 = vector.broadcast %cst_40 : f32 to vector<8x32xf32>
    %67 = arith.mulf %66, %50 : vector<8x32xf32>
    %68 = arith.addf %65, %67 : vector<8x32xf32>
    %69 = arith.mulf %63, %34 : vector<8x32xf32>
    %cst_41 = arith.constant 1.000000e+00 : f32
    %70 = vector.broadcast %cst_41 : f32 to vector<8x32xf32>
    %71 = arith.mulf %69, %70 : vector<8x32xf32>
    %72 = arith.subf %68, %71 : vector<8x32xf32>
    %73 = arith.subf %72, %63 : vector<8x32xf32>
    %cst_42 = arith.constant 0.000000e+00 : f32
    %74 = vector.broadcast %cst_42 : f32 to vector<8x32xf32>
    %75 = arith.cmpf ogt, %73, %74 : vector<8x32xf32>
    %76 = arith.extui %75 : vector<8x32xi1> to vector<8x32xi32>
    %77 = arith.sitofp %76 : vector<8x32xi32> to vector<8x32xf32>
    %78 = arith.truncf %77 : vector<8x32xf32> to vector<8x32xbf16>
    %cst_43 = arith.constant dense<0.000000e+00> : vector<8x32xf32>
    %79 = tpu.matmul %78, %1, %cst_43 {dimension_numbers = #tpu.dot_dimension_numbers<[1], [0], [0], [1], [0, 0, 1, 1], [], []>} : vector<8x32xbf16>, vector<32x32xbf16>, vector<8x32xf32> -> vector<8x32xf32>
    %80 = vector.extract_strided_slice %47 {offsets = [0, 32], sizes = [8, 32], strides = [1, 1]} : vector<8x64xf32> to vector<8x32xf32>
    %81 = arith.addf %79, %80 : vector<8x32xf32>
    %82 = vector.broadcast %18 : vector<1x32xf32> to vector<8x32xf32>
    %83 = arith.addf %81, %82 : vector<8x32xf32>
    %84 = vector.broadcast %14 : vector<1x32xf32> to vector<8x32xf32>
    %85 = arith.mulf %84, %41 : vector<8x32xf32>
    %86 = vector.broadcast %16 : vector<1x32xf32> to vector<8x32xf32>
    %87 = arith.mulf %86, %36 : vector<8x32xf32>
    %88 = arith.addf %85, %87 : vector<8x32xf32>
    %89 = vector.broadcast %15 : vector<1x32xf32> to vector<8x32xf32>
    %90 = arith.mulf %89, %42 : vector<8x32xf32>
    %91 = vector.broadcast %17 : vector<1x32xf32> to vector<8x32xf32>
    %92 = arith.mulf %91, %36 : vector<8x32xf32>
    %93 = arith.addf %90, %92 : vector<8x32xf32>
    %cst_44 = arith.constant 0.00999999977 : f32
    %94 = vector.broadcast %cst_44 : f32 to vector<8x32xf32>
    %95 = arith.addf %94, %88 : vector<8x32xf32>
    %96 = arith.addf %95, %93 : vector<8x32xf32>
    %97 = vector.broadcast %13 : vector<1x32xf32> to vector<8x32xf32>
    %98 = arith.mulf %35, %97 : vector<8x32xf32>
    %cst_45 = arith.constant 1.000000e+00 : f32
    %99 = vector.broadcast %cst_45 : f32 to vector<8x32xf32>
    %100 = arith.mulf %99, %83 : vector<8x32xf32>
    %101 = arith.addf %98, %100 : vector<8x32xf32>
    %102 = arith.mulf %96, %36 : vector<8x32xf32>
    %cst_46 = arith.constant 1.000000e+00 : f32
    %103 = vector.broadcast %cst_46 : f32 to vector<8x32xf32>
    %104 = arith.mulf %102, %103 : vector<8x32xf32>
    %105 = arith.subf %101, %104 : vector<8x32xf32>
    %106 = arith.subf %105, %96 : vector<8x32xf32>
    %cst_47 = arith.constant 0.000000e+00 : f32
    %107 = vector.broadcast %cst_47 : f32 to vector<8x32xf32>
    %108 = arith.cmpf ogt, %106, %107 : vector<8x32xf32>
    %109 = arith.extui %108 : vector<8x32xi1> to vector<8x32xi32>
    %110 = arith.sitofp %109 : vector<8x32xi32> to vector<8x32xf32>
    %111 = tpu.concatenate %77, %110 in 1 : vector<8x32xf32>, vector<8x32xf32> -> vector<8x64xf32>
    %c0_48 = arith.constant 0 : index
    %c0_49 = arith.constant 0 : index
    %112 = vector.load %arg15[%c0_48, %c0_49] : memref<64x32xf32, #tpu.memory_space<vmem>>, vector<8x32xf32>
    tpu.vector_store %arg15[%c0_48, %c0_49], %110 {strides = array<i32>} : memref<64x32xf32, #tpu.memory_space<vmem>>, vector<8x32xf32>,
    %113 = arith.truncf %111 : vector<8x64xf32> to vector<8x64xbf16>
    %cst_50 = arith.constant dense<0.000000e+00> : vector<8x64xf32>
    %114 = tpu.matmul %113, %0, %cst_50 {dimension_numbers = #tpu.dot_dimension_numbers<[1], [0], [0], [1], [0, 0, 1, 1], [], []>} : vector<8x64xbf16>, vector<64x64xbf16>, vector<8x64xf32> -> vector<8x64xf32>
    %115 = vector.extract_strided_slice %32 {offsets = [8, 0], sizes = [8, 32], strides = [1, 1]} : vector<64x32xf32> to vector<8x32xf32>
    %116 = vector.extract_strided_slice %114 {offsets = [0, 0], sizes = [8, 32], strides = [1, 1]} : vector<8x64xf32> to vector<8x32xf32>
    %117 = arith.addf %115, %116 : vector<8x32xf32>
    %118 = vector.broadcast %7 : vector<1x32xf32> to vector<8x32xf32>
    %119 = arith.mulf %118, %55 : vector<8x32xf32>
    %120 = vector.broadcast %9 : vector<1x32xf32> to vector<8x32xf32>
    %121 = arith.mulf %120, %77 : vector<8x32xf32>
    %122 = arith.addf %119, %121 : vector<8x32xf32>
    %123 = vector.broadcast %8 : vector<1x32xf32> to vector<8x32xf32>
    %124 = arith.mulf %123, %60 : vector<8x32xf32>
    %125 = vector.broadcast %10 : vector<1x32xf32> to vector<8x32xf32>
    %126 = arith.mulf %125, %77 : vector<8x32xf32>
    %127 = arith.addf %124, %126 : vector<8x32xf32>
    %cst_51 = arith.constant 0.00999999977 : f32
    %128 = vector.broadcast %cst_51 : f32 to vector<8x32xf32>
    %129 = arith.addf %128, %122 : vector<8x32xf32>
    %130 = arith.addf %129, %127 : vector<8x32xf32>
    %131 = vector.broadcast %6 : vector<1x32xf32> to vector<8x32xf32>
    %132 = arith.mulf %72, %131 : vector<8x32xf32>
    %cst_52 = arith.constant 1.000000e+00 : f32
    %133 = vector.broadcast %cst_52 : f32 to vector<8x32xf32>
    %134 = arith.mulf %133, %117 : vector<8x32xf32>
    %135 = arith.addf %132, %134 : vector<8x32xf32>
    %136 = arith.mulf %130, %77 : vector<8x32xf32>
    %cst_53 = arith.constant 1.000000e+00 : f32
    %137 = vector.broadcast %cst_53 : f32 to vector<8x32xf32>
    %138 = arith.mulf %136, %137 : vector<8x32xf32>
    %139 = arith.subf %135, %138 : vector<8x32xf32>
    %140 = arith.subf %139, %130 : vector<8x32xf32>
    %cst_54 = arith.constant 0.000000e+00 : f32
    %141 = vector.broadcast %cst_54 : f32 to vector<8x32xf32>
    %142 = arith.cmpf ogt, %140, %141 : vector<8x32xf32>
    %143 = arith.extui %142 : vector<8x32xi1> to vector<8x32xi32>
    %144 = arith.sitofp %143 : vector<8x32xi32> to vector<8x32xf32>
    %145 = arith.truncf %144 : vector<8x32xf32> to vector<8x32xbf16>
    %cst_55 = arith.constant dense<0.000000e+00> : vector<8x32xf32>
    %146 = tpu.matmul %145, %1, %cst_55 {dimension_numbers = #tpu.dot_dimension_numbers<[1], [0], [0], [1], [0, 0, 1, 1], [], []>} : vector<8x32xbf16>, vector<32x32xbf16>, vector<8x32xf32> -> vector<8x32xf32>
    %147 = vector.extract_strided_slice %114 {offsets = [0, 32], sizes = [8, 32], strides = [1, 1]} : vector<8x64xf32> to vector<8x32xf32>
    %148 = arith.addf %146, %147 : vector<8x32xf32>
    %149 = vector.broadcast %18 : vector<1x32xf32> to vector<8x32xf32>
    %150 = arith.addf %148, %149 : vector<8x32xf32>
    %151 = vector.broadcast %14 : vector<1x32xf32> to vector<8x32xf32>
    %152 = arith.mulf %151, %88 : vector<8x32xf32>
    %153 = vector.broadcast %16 : vector<1x32xf32> to vector<8x32xf32>
    %154 = arith.mulf %153, %110 : vector<8x32xf32>
    %155 = arith.addf %152, %154 : vector<8x32xf32>
    %156 = vector.broadcast %15 : vector<1x32xf32> to vector<8x32xf32>
    %157 = arith.mulf %156, %93 : vector<8x32xf32>
    %158 = vector.broadcast %17 : vector<1x32xf32> to vector<8x32xf32>
    %159 = arith.mulf %158, %110 : vector<8x32xf32>
    %160 = arith.addf %157, %159 : vector<8x32xf32>
    %cst_56 = arith.constant 0.00999999977 : f32
    %161 = vector.broadcast %cst_56 : f32 to vector<8x32xf32>
    %162 = arith.addf %161, %155 : vector<8x32xf32>
    %163 = arith.addf %162, %160 : vector<8x32xf32>
    %164 = vector.broadcast %13 : vector<1x32xf32> to vector<8x32xf32>
    %165 = arith.mulf %105, %164 : vector<8x32xf32>
    %cst_57 = arith.constant 1.000000e+00 : f32
    %166 = vector.broadcast %cst_57 : f32 to vector<8x32xf32>
    %167 = arith.mulf %166, %150 : vector<8x32xf32>
    %168 = arith.addf %165, %167 : vector<8x32xf32>
    %169 = arith.mulf %163, %110 : vector<8x32xf32>
    %cst_58 = arith.constant 1.000000e+00 : f32
    %170 = vector.broadcast %cst_58 : f32 to vector<8x32xf32>
    %171 = arith.mulf %169, %170 : vector<8x32xf32>
    %172 = arith.subf %168, %171 : vector<8x32xf32>
    %173 = arith.subf %172, %163 : vector<8x32xf32>
    %cst_59 = arith.constant 0.000000e+00 : f32
    %174 = vector.broadcast %cst_59 : f32 to vector<8x32xf32>
    %175 = arith.cmpf ogt, %173, %174 : vector<8x32xf32>
    %176 = arith.extui %175 : vector<8x32xi1> to vector<8x32xi32>
    %177 = arith.sitofp %176 : vector<8x32xi32> to vector<8x32xf32>
    %178 = tpu.concatenate %144, %177 in 1 : vector<8x32xf32>, vector<8x32xf32> -> vector<8x64xf32>
    %c8 = arith.constant 8 : index
    %c0_60 = arith.constant 0 : index
    %179 = vector.load %arg15[%c8, %c0_60] : memref<64x32xf32, #tpu.memory_space<vmem>>, vector<8x32xf32>
    tpu.vector_store %arg15[%c8, %c0_60], %177 {strides = array<i32>} : memref<64x32xf32, #tpu.memory_space<vmem>>, vector<8x32xf32>,
    %180 = arith.truncf %178 : vector<8x64xf32> to vector<8x64xbf16>
    %cst_61 = arith.constant dense<0.000000e+00> : vector<8x64xf32>
    %181 = tpu.matmul %180, %0, %cst_61 {dimension_numbers = #tpu.dot_dimension_numbers<[1], [0], [0], [1], [0, 0, 1, 1], [], []>} : vector<8x64xbf16>, vector<64x64xbf16>, vector<8x64xf32> -> vector<8x64xf32>
    %182 = vector.extract_strided_slice %32 {offsets = [16, 0], sizes = [8, 32], strides = [1, 1]} : vector<64x32xf32> to vector<8x32xf32>
    %183 = vector.extract_strided_slice %181 {offsets = [0, 0], sizes = [8, 32], strides = [1, 1]} : vector<8x64xf32> to vector<8x32xf32>
    %184 = arith.addf %182, %183 : vector<8x32xf32>
    %185 = vector.broadcast %7 : vector<1x32xf32> to vector<8x32xf32>
    %186 = arith.mulf %185, %122 : vector<8x32xf32>
    %187 = vector.broadcast %9 : vector<1x32xf32> to vector<8x32xf32>
    %188 = arith.mulf %187, %144 : vector<8x32xf32>
    %189 = arith.addf %186, %188 : vector<8x32xf32>
    %190 = vector.broadcast %8 : vector<1x32xf32> to vector<8x32xf32>
    %191 = arith.mulf %190, %127 : vector<8x32xf32>
    %192 = vector.broadcast %10 : vector<1x32xf32> to vector<8x32xf32>
    %193 = arith.mulf %192, %144 : vector<8x32xf32>
    %194 = arith.addf %191, %193 : vector<8x32xf32>
    %cst_62 = arith.constant 0.00999999977 : f32
    %195 = vector.broadcast %cst_62 : f32 to vector<8x32xf32>
    %196 = arith.addf %195, %189 : vector<8x32xf32>
    %197 = arith.addf %196, %194 : vector<8x32xf32>
    %198 = vector.broadcast %6 : vector<1x32xf32> to vector<8x32xf32>
    %199 = arith.mulf %139, %198 : vector<8x32xf32>
    %cst_63 = arith.constant 1.000000e+00 : f32
    %200 = vector.broadcast %cst_63 : f32 to vector<8x32xf32>
    %201 = arith.mulf %200, %184 : vector<8x32xf32>
    %202 = arith.addf %199, %201 : vector<8x32xf32>
    %203 = arith.mulf %197, %144 : vector<8x32xf32>
    %cst_64 = arith.constant 1.000000e+00 : f32
    %204 = vector.broadcast %cst_64 : f32 to vector<8x32xf32>
    %205 = arith.mulf %203, %204 : vector<8x32xf32>
    %206 = arith.subf %202, %205 : vector<8x32xf32>
    %207 = arith.subf %206, %197 : vector<8x32xf32>
    %cst_65 = arith.constant 0.000000e+00 : f32
    %208 = vector.broadcast %cst_65 : f32 to vector<8x32xf32>
    %209 = arith.cmpf ogt, %207, %208 : vector<8x32xf32>
    %210 = arith.extui %209 : vector<8x32xi1> to vector<8x32xi32>
    %211 = arith.sitofp %210 : vector<8x32xi32> to vector<8x32xf32>
    %212 = arith.truncf %211 : vector<8x32xf32> to vector<8x32xbf16>
    %cst_66 = arith.constant dense<0.000000e+00> : vector<8x32xf32>
    %213 = tpu.matmul %212, %1, %cst_66 {dimension_numbers = #tpu.dot_dimension_numbers<[1], [0], [0], [1], [0, 0, 1, 1], [], []>} : vector<8x32xbf16>, vector<32x32xbf16>, vector<8x32xf32> -> vector<8x32xf32>
    %214 = vector.extract_strided_slice %181 {offsets = [0, 32], sizes = [8, 32], strides = [1, 1]} : vector<8x64xf32> to vector<8x32xf32>
    %215 = arith.addf %213, %214 : vector<8x32xf32>
    %216 = vector.broadcast %18 : vector<1x32xf32> to vector<8x32xf32>
    %217 = arith.addf %215, %216 : vector<8x32xf32>
    %218 = vector.broadcast %14 : vector<1x32xf32> to vector<8x32xf32>
    %219 = arith.mulf %218, %155 : vector<8x32xf32>
    %220 = vector.broadcast %16 : vector<1x32xf32> to vector<8x32xf32>
    %221 = arith.mulf %220, %177 : vector<8x32xf32>
    %222 = arith.addf %219, %221 : vector<8x32xf32>
    %223 = vector.broadcast %15 : vector<1x32xf32> to vector<8x32xf32>
    %224 = arith.mulf %223, %160 : vector<8x32xf32>
    %225 = vector.broadcast %17 : vector<1x32xf32> to vector<8x32xf32>
    %226 = arith.mulf %225, %177 : vector<8x32xf32>
    %227 = arith.addf %224, %226 : vector<8x32xf32>
    %cst_67 = arith.constant 0.00999999977 : f32
    %228 = vector.broadcast %cst_67 : f32 to vector<8x32xf32>
    %229 = arith.addf %228, %222 : vector<8x32xf32>
    %230 = arith.addf %229, %227 : vector<8x32xf32>
    %231 = vector.broadcast %13 : vector<1x32xf32> to vector<8x32xf32>
    %232 = arith.mulf %172, %231 : vector<8x32xf32>
    %cst_68 = arith.constant 1.000000e+00 : f32
    %233 = vector.broadcast %cst_68 : f32 to vector<8x32xf32>
    %234 = arith.mulf %233, %217 : vector<8x32xf32>
    %235 = arith.addf %232, %234 : vector<8x32xf32>
    %236 = arith.mulf %230, %177 : vector<8x32xf32>
    %cst_69 = arith.constant 1.000000e+00 : f32
    %237 = vector.broadcast %cst_69 : f32 to vector<8x32xf32>
    %238 = arith.mulf %236, %237 : vector<8x32xf32>
    %239 = arith.subf %235, %238 : vector<8x32xf32>
    %240 = arith.subf %239, %230 : vector<8x32xf32>
    %cst_70 = arith.constant 0.000000e+00 : f32
    %241 = vector.broadcast %cst_70 : f32 to vector<8x32xf32>
    %242 = arith.cmpf ogt, %240, %241 : vector<8x32xf32>
    %243 = arith.extui %242 : vector<8x32xi1> to vector<8x32xi32>
    %244 = arith.sitofp %243 : vector<8x32xi32> to vector<8x32xf32>
    %245 = tpu.concatenate %211, %244 in 1 : vector<8x32xf32>, vector<8x32xf32> -> vector<8x64xf32>
    %c16 = arith.constant 16 : index
    %c0_71 = arith.constant 0 : index
    %246 = vector.load %arg15[%c16, %c0_71] : memref<64x32xf32, #tpu.memory_space<vmem>>, vector<8x32xf32>
    tpu.vector_store %arg15[%c16, %c0_71], %244 {strides = array<i32>} : memref<64x32xf32, #tpu.memory_space<vmem>>, vector<8x32xf32>,
    %247 = arith.truncf %245 : vector<8x64xf32> to vector<8x64xbf16>
    %cst_72 = arith.constant dense<0.000000e+00> : vector<8x64xf32>
    %248 = tpu.matmul %247, %0, %cst_72 {dimension_numbers = #tpu.dot_dimension_numbers<[1], [0], [0], [1], [0, 0, 1, 1], [], []>} : vector<8x64xbf16>, vector<64x64xbf16>, vector<8x64xf32> -> vector<8x64xf32>
    %249 = vector.extract_strided_slice %32 {offsets = [24, 0], sizes = [8, 32], strides = [1, 1]} : vector<64x32xf32> to vector<8x32xf32>
    %250 = vector.extract_strided_slice %248 {offsets = [0, 0], sizes = [8, 32], strides = [1, 1]} : vector<8x64xf32> to vector<8x32xf32>
    %251 = arith.addf %249, %250 : vector<8x32xf32>
    %252 = vector.broadcast %7 : vector<1x32xf32> to vector<8x32xf32>
    %253 = arith.mulf %252, %189 : vector<8x32xf32>
    %254 = vector.broadcast %9 : vector<1x32xf32> to vector<8x32xf32>
    %255 = arith.mulf %254, %211 : vector<8x32xf32>
    %256 = arith.addf %253, %255 : vector<8x32xf32>
    %257 = vector.broadcast %8 : vector<1x32xf32> to vector<8x32xf32>
    %258 = arith.mulf %257, %194 : vector<8x32xf32>
    %259 = vector.broadcast %10 : vector<1x32xf32> to vector<8x32xf32>
    %260 = arith.mulf %259, %211 : vector<8x32xf32>
    %261 = arith.addf %258, %260 : vector<8x32xf32>
    %cst_73 = arith.constant 0.00999999977 : f32
    %262 = vector.broadcast %cst_73 : f32 to vector<8x32xf32>
    %263 = arith.addf %262, %256 : vector<8x32xf32>
    %264 = arith.addf %263, %261 : vector<8x32xf32>
    %265 = vector.broadcast %6 : vector<1x32xf32> to vector<8x32xf32>
    %266 = arith.mulf %206, %265 : vector<8x32xf32>
    %cst_74 = arith.constant 1.000000e+00 : f32
    %267 = vector.broadcast %cst_74 : f32 to vector<8x32xf32>
    %268 = arith.mulf %267, %251 : vector<8x32xf32>
    %269 = arith.addf %266, %268 : vector<8x32xf32>
    %270 = arith.mulf %264, %211 : vector<8x32xf32>
    %cst_75 = arith.constant 1.000000e+00 : f32
    %271 = vector.broadcast %cst_75 : f32 to vector<8x32xf32>
    %272 = arith.mulf %270, %271 : vector<8x32xf32>
    %273 = arith.subf %269, %272 : vector<8x32xf32>
    %274 = arith.subf %273, %264 : vector<8x32xf32>
    %cst_76 = arith.constant 0.000000e+00 : f32
    %275 = vector.broadcast %cst_76 : f32 to vector<8x32xf32>
    %276 = arith.cmpf ogt, %274, %275 : vector<8x32xf32>
    %277 = arith.extui %276 : vector<8x32xi1> to vector<8x32xi32>
    %278 = arith.sitofp %277 : vector<8x32xi32> to vector<8x32xf32>
    %279 = arith.truncf %278 : vector<8x32xf32> to vector<8x32xbf16>
    %cst_77 = arith.constant dense<0.000000e+00> : vector<8x32xf32>
    %280 = tpu.matmul %279, %1, %cst_77 {dimension_numbers = #tpu.dot_dimension_numbers<[1], [0], [0], [1], [0, 0, 1, 1], [], []>} : vector<8x32xbf16>, vector<32x32xbf16>, vector<8x32xf32> -> vector<8x32xf32>
    %281 = vector.extract_strided_slice %248 {offsets = [0, 32], sizes = [8, 32], strides = [1, 1]} : vector<8x64xf32> to vector<8x32xf32>
    %282 = arith.addf %280, %281 : vector<8x32xf32>
    %283 = vector.broadcast %18 : vector<1x32xf32> to vector<8x32xf32>
    %284 = arith.addf %282, %283 : vector<8x32xf32>
    %285 = vector.broadcast %14 : vector<1x32xf32> to vector<8x32xf32>
    %286 = arith.mulf %285, %222 : vector<8x32xf32>
    %287 = vector.broadcast %16 : vector<1x32xf32> to vector<8x32xf32>
    %288 = arith.mulf %287, %244 : vector<8x32xf32>
    %289 = arith.addf %286, %288 : vector<8x32xf32>
    %290 = vector.broadcast %15 : vector<1x32xf32> to vector<8x32xf32>
    %291 = arith.mulf %290, %227 : vector<8x32xf32>
    %292 = vector.broadcast %17 : vector<1x32xf32> to vector<8x32xf32>
    %293 = arith.mulf %292, %244 : vector<8x32xf32>
    %294 = arith.addf %291, %293 : vector<8x32xf32>
    %cst_78 = arith.constant 0.00999999977 : f32
    %295 = vector.broadcast %cst_78 : f32 to vector<8x32xf32>
    %296 = arith.addf %295, %289 : vector<8x32xf32>
    %297 = arith.addf %296, %294 : vector<8x32xf32>
    %298 = vector.broadcast %13 : vector<1x32xf32> to vector<8x32xf32>
    %299 = arith.mulf %239, %298 : vector<8x32xf32>
    %cst_79 = arith.constant 1.000000e+00 : f32
    %300 = vector.broadcast %cst_79 : f32 to vector<8x32xf32>
    %301 = arith.mulf %300, %284 : vector<8x32xf32>
    %302 = arith.addf %299, %301 : vector<8x32xf32>
    %303 = arith.mulf %297, %244 : vector<8x32xf32>
    %cst_80 = arith.constant 1.000000e+00 : f32
    %304 = vector.broadcast %cst_80 : f32 to vector<8x32xf32>
    %305 = arith.mulf %303, %304 : vector<8x32xf32>
    %306 = arith.subf %302, %305 : vector<8x32xf32>
    %307 = arith.subf %306, %297 : vector<8x32xf32>
    %cst_81 = arith.constant 0.000000e+00 : f32
    %308 = vector.broadcast %cst_81 : f32 to vector<8x32xf32>
    %309 = arith.cmpf ogt, %307, %308 : vector<8x32xf32>
    %310 = arith.extui %309 : vector<8x32xi1> to vector<8x32xi32>
    %311 = arith.sitofp %310 : vector<8x32xi32> to vector<8x32xf32>
    %312 = tpu.concatenate %278, %311 in 1 : vector<8x32xf32>, vector<8x32xf32> -> vector<8x64xf32>
    %c24 = arith.constant 24 : index
    %c0_82 = arith.constant 0 : index
    %313 = vector.load %arg15[%c24, %c0_82] : memref<64x32xf32, #tpu.memory_space<vmem>>, vector<8x32xf32>
    tpu.vector_store %arg15[%c24, %c0_82], %311 {strides = array<i32>} : memref<64x32xf32, #tpu.memory_space<vmem>>, vector<8x32xf32>,
    %314 = arith.truncf %312 : vector<8x64xf32> to vector<8x64xbf16>
    %cst_83 = arith.constant dense<0.000000e+00> : vector<8x64xf32>
    %315 = tpu.matmul %314, %0, %cst_83 {dimension_numbers = #tpu.dot_dimension_numbers<[1], [0], [0], [1], [0, 0, 1, 1], [], []>} : vector<8x64xbf16>, vector<64x64xbf16>, vector<8x64xf32> -> vector<8x64xf32>
    %316 = vector.extract_strided_slice %32 {offsets = [32, 0], sizes = [8, 32], strides = [1, 1]} : vector<64x32xf32> to vector<8x32xf32>
    %317 = vector.extract_strided_slice %315 {offsets = [0, 0], sizes = [8, 32], strides = [1, 1]} : vector<8x64xf32> to vector<8x32xf32>
    %318 = arith.addf %316, %317 : vector<8x32xf32>
    %319 = vector.broadcast %7 : vector<1x32xf32> to vector<8x32xf32>
    %320 = arith.mulf %319, %256 : vector<8x32xf32>
    %321 = vector.broadcast %9 : vector<1x32xf32> to vector<8x32xf32>
    %322 = arith.mulf %321, %278 : vector<8x32xf32>
    %323 = arith.addf %320, %322 : vector<8x32xf32>
    %324 = vector.broadcast %8 : vector<1x32xf32> to vector<8x32xf32>
    %325 = arith.mulf %324, %261 : vector<8x32xf32>
    %326 = vector.broadcast %10 : vector<1x32xf32> to vector<8x32xf32>
    %327 = arith.mulf %326, %278 : vector<8x32xf32>
    %328 = arith.addf %325, %327 : vector<8x32xf32>
    %cst_84 = arith.constant 0.00999999977 : f32
    %329 = vector.broadcast %cst_84 : f32 to vector<8x32xf32>
    %330 = arith.addf %329, %323 : vector<8x32xf32>
    %331 = arith.addf %330, %328 : vector<8x32xf32>
    %332 = vector.broadcast %6 : vector<1x32xf32> to vector<8x32xf32>
    %333 = arith.mulf %273, %332 : vector<8x32xf32>
    %cst_85 = arith.constant 1.000000e+00 : f32
    %334 = vector.broadcast %cst_85 : f32 to vector<8x32xf32>
    %335 = arith.mulf %334, %318 : vector<8x32xf32>
    %336 = arith.addf %333, %335 : vector<8x32xf32>
    %337 = arith.mulf %331, %278 : vector<8x32xf32>
    %cst_86 = arith.constant 1.000000e+00 : f32
    %338 = vector.broadcast %cst_86 : f32 to vector<8x32xf32>
    %339 = arith.mulf %337, %338 : vector<8x32xf32>
    %340 = arith.subf %336, %339 : vector<8x32xf32>
    %341 = arith.subf %340, %331 : vector<8x32xf32>
    %cst_87 = arith.constant 0.000000e+00 : f32
    %342 = vector.broadcast %cst_87 : f32 to vector<8x32xf32>
    %343 = arith.cmpf ogt, %341, %342 : vector<8x32xf32>
    %344 = arith.extui %343 : vector<8x32xi1> to vector<8x32xi32>
    %345 = arith.sitofp %344 : vector<8x32xi32> to vector<8x32xf32>
    %346 = arith.truncf %345 : vector<8x32xf32> to vector<8x32xbf16>
    %cst_88 = arith.constant dense<0.000000e+00> : vector<8x32xf32>
    %347 = tpu.matmul %346, %1, %cst_88 {dimension_numbers = #tpu.dot_dimension_numbers<[1], [0], [0], [1], [0, 0, 1, 1], [], []>} : vector<8x32xbf16>, vector<32x32xbf16>, vector<8x32xf32> -> vector<8x32xf32>
    %348 = vector.extract_strided_slice %315 {offsets = [0, 32], sizes = [8, 32], strides = [1, 1]} : vector<8x64xf32> to vector<8x32xf32>
    %349 = arith.addf %347, %348 : vector<8x32xf32>
    %350 = vector.broadcast %18 : vector<1x32xf32> to vector<8x32xf32>
    %351 = arith.addf %349, %350 : vector<8x32xf32>
    %352 = vector.broadcast %14 : vector<1x32xf32> to vector<8x32xf32>
    %353 = arith.mulf %352, %289 : vector<8x32xf32>
    %354 = vector.broadcast %16 : vector<1x32xf32> to vector<8x32xf32>
    %355 = arith.mulf %354, %311 : vector<8x32xf32>
    %356 = arith.addf %353, %355 : vector<8x32xf32>
    %357 = vector.broadcast %15 : vector<1x32xf32> to vector<8x32xf32>
    %358 = arith.mulf %357, %294 : vector<8x32xf32>
    %359 = vector.broadcast %17 : vector<1x32xf32> to vector<8x32xf32>
    %360 = arith.mulf %359, %311 : vector<8x32xf32>
    %361 = arith.addf %358, %360 : vector<8x32xf32>
    %cst_89 = arith.constant 0.00999999977 : f32
    %362 = vector.broadcast %cst_89 : f32 to vector<8x32xf32>
    %363 = arith.addf %362, %356 : vector<8x32xf32>
    %364 = arith.addf %363, %361 : vector<8x32xf32>
    %365 = vector.broadcast %13 : vector<1x32xf32> to vector<8x32xf32>
    %366 = arith.mulf %306, %365 : vector<8x32xf32>
    %cst_90 = arith.constant 1.000000e+00 : f32
    %367 = vector.broadcast %cst_90 : f32 to vector<8x32xf32>
    %368 = arith.mulf %367, %351 : vector<8x32xf32>
    %369 = arith.addf %366, %368 : vector<8x32xf32>
    %370 = arith.mulf %364, %311 : vector<8x32xf32>
    %cst_91 = arith.constant 1.000000e+00 : f32
    %371 = vector.broadcast %cst_91 : f32 to vector<8x32xf32>
    %372 = arith.mulf %370, %371 : vector<8x32xf32>
    %373 = arith.subf %369, %372 : vector<8x32xf32>
    %374 = arith.subf %373, %364 : vector<8x32xf32>
    %cst_92 = arith.constant 0.000000e+00 : f32
    %375 = vector.broadcast %cst_92 : f32 to vector<8x32xf32>
    %376 = arith.cmpf ogt, %374, %375 : vector<8x32xf32>
    %377 = arith.extui %376 : vector<8x32xi1> to vector<8x32xi32>
    %378 = arith.sitofp %377 : vector<8x32xi32> to vector<8x32xf32>
    %379 = tpu.concatenate %345, %378 in 1 : vector<8x32xf32>, vector<8x32xf32> -> vector<8x64xf32>
    %c32 = arith.constant 32 : index
    %c0_93 = arith.constant 0 : index
    %380 = vector.load %arg15[%c32, %c0_93] : memref<64x32xf32, #tpu.memory_space<vmem>>, vector<8x32xf32>
    tpu.vector_store %arg15[%c32, %c0_93], %378 {strides = array<i32>} : memref<64x32xf32, #tpu.memory_space<vmem>>, vector<8x32xf32>,
    %381 = arith.truncf %379 : vector<8x64xf32> to vector<8x64xbf16>
    %cst_94 = arith.constant dense<0.000000e+00> : vector<8x64xf32>
    %382 = tpu.matmul %381, %0, %cst_94 {dimension_numbers = #tpu.dot_dimension_numbers<[1], [0], [0], [1], [0, 0, 1, 1], [], []>} : vector<8x64xbf16>, vector<64x64xbf16>, vector<8x64xf32> -> vector<8x64xf32>
    %383 = vector.extract_strided_slice %32 {offsets = [40, 0], sizes = [8, 32], strides = [1, 1]} : vector<64x32xf32> to vector<8x32xf32>
    %384 = vector.extract_strided_slice %382 {offsets = [0, 0], sizes = [8, 32], strides = [1, 1]} : vector<8x64xf32> to vector<8x32xf32>
    %385 = arith.addf %383, %384 : vector<8x32xf32>
    %386 = vector.broadcast %7 : vector<1x32xf32> to vector<8x32xf32>
    %387 = arith.mulf %386, %323 : vector<8x32xf32>
    %388 = vector.broadcast %9 : vector<1x32xf32> to vector<8x32xf32>
    %389 = arith.mulf %388, %345 : vector<8x32xf32>
    %390 = arith.addf %387, %389 : vector<8x32xf32>
    %391 = vector.broadcast %8 : vector<1x32xf32> to vector<8x32xf32>
    %392 = arith.mulf %391, %328 : vector<8x32xf32>
    %393 = vector.broadcast %10 : vector<1x32xf32> to vector<8x32xf32>
    %394 = arith.mulf %393, %345 : vector<8x32xf32>
    %395 = arith.addf %392, %394 : vector<8x32xf32>
    %cst_95 = arith.constant 0.00999999977 : f32
    %396 = vector.broadcast %cst_95 : f32 to vector<8x32xf32>
    %397 = arith.addf %396, %390 : vector<8x32xf32>
    %398 = arith.addf %397, %395 : vector<8x32xf32>
    %399 = vector.broadcast %6 : vector<1x32xf32> to vector<8x32xf32>
    %400 = arith.mulf %340, %399 : vector<8x32xf32>
    %cst_96 = arith.constant 1.000000e+00 : f32
    %401 = vector.broadcast %cst_96 : f32 to vector<8x32xf32>
    %402 = arith.mulf %401, %385 : vector<8x32xf32>
    %403 = arith.addf %400, %402 : vector<8x32xf32>
    %404 = arith.mulf %398, %345 : vector<8x32xf32>
    %cst_97 = arith.constant 1.000000e+00 : f32
    %405 = vector.broadcast %cst_97 : f32 to vector<8x32xf32>
    %406 = arith.mulf %404, %405 : vector<8x32xf32>
    %407 = arith.subf %403, %406 : vector<8x32xf32>
    %408 = arith.subf %407, %398 : vector<8x32xf32>
    %cst_98 = arith.constant 0.000000e+00 : f32
    %409 = vector.broadcast %cst_98 : f32 to vector<8x32xf32>
    %410 = arith.cmpf ogt, %408, %409 : vector<8x32xf32>
    %411 = arith.extui %410 : vector<8x32xi1> to vector<8x32xi32>
    %412 = arith.sitofp %411 : vector<8x32xi32> to vector<8x32xf32>
    %413 = arith.truncf %412 : vector<8x32xf32> to vector<8x32xbf16>
    %cst_99 = arith.constant dense<0.000000e+00> : vector<8x32xf32>
    %414 = tpu.matmul %413, %1, %cst_99 {dimension_numbers = #tpu.dot_dimension_numbers<[1], [0], [0], [1], [0, 0, 1, 1], [], []>} : vector<8x32xbf16>, vector<32x32xbf16>, vector<8x32xf32> -> vector<8x32xf32>
    %415 = vector.extract_strided_slice %382 {offsets = [0, 32], sizes = [8, 32], strides = [1, 1]} : vector<8x64xf32> to vector<8x32xf32>
    %416 = arith.addf %414, %415 : vector<8x32xf32>
    %417 = vector.broadcast %18 : vector<1x32xf32> to vector<8x32xf32>
    %418 = arith.addf %416, %417 : vector<8x32xf32>
    %419 = vector.broadcast %14 : vector<1x32xf32> to vector<8x32xf32>
    %420 = arith.mulf %419, %356 : vector<8x32xf32>
    %421 = vector.broadcast %16 : vector<1x32xf32> to vector<8x32xf32>
    %422 = arith.mulf %421, %378 : vector<8x32xf32>
    %423 = arith.addf %420, %422 : vector<8x32xf32>
    %424 = vector.broadcast %15 : vector<1x32xf32> to vector<8x32xf32>
    %425 = arith.mulf %424, %361 : vector<8x32xf32>
    %426 = vector.broadcast %17 : vector<1x32xf32> to vector<8x32xf32>
    %427 = arith.mulf %426, %378 : vector<8x32xf32>
    %428 = arith.addf %425, %427 : vector<8x32xf32>
    %cst_100 = arith.constant 0.00999999977 : f32
    %429 = vector.broadcast %cst_100 : f32 to vector<8x32xf32>
    %430 = arith.addf %429, %423 : vector<8x32xf32>
    %431 = arith.addf %430, %428 : vector<8x32xf32>
    %432 = vector.broadcast %13 : vector<1x32xf32> to vector<8x32xf32>
    %433 = arith.mulf %373, %432 : vector<8x32xf32>
    %cst_101 = arith.constant 1.000000e+00 : f32
    %434 = vector.broadcast %cst_101 : f32 to vector<8x32xf32>
    %435 = arith.mulf %434, %418 : vector<8x32xf32>
    %436 = arith.addf %433, %435 : vector<8x32xf32>
    %437 = arith.mulf %431, %378 : vector<8x32xf32>
    %cst_102 = arith.constant 1.000000e+00 : f32
    %438 = vector.broadcast %cst_102 : f32 to vector<8x32xf32>
    %439 = arith.mulf %437, %438 : vector<8x32xf32>
    %440 = arith.subf %436, %439 : vector<8x32xf32>
    %441 = arith.subf %440, %431 : vector<8x32xf32>
    %cst_103 = arith.constant 0.000000e+00 : f32
    %442 = vector.broadcast %cst_103 : f32 to vector<8x32xf32>
    %443 = arith.cmpf ogt, %441, %442 : vector<8x32xf32>
    %444 = arith.extui %443 : vector<8x32xi1> to vector<8x32xi32>
    %445 = arith.sitofp %444 : vector<8x32xi32> to vector<8x32xf32>
    %446 = tpu.concatenate %412, %445 in 1 : vector<8x32xf32>, vector<8x32xf32> -> vector<8x64xf32>
    %c40 = arith.constant 40 : index
    %c0_104 = arith.constant 0 : index
    %447 = vector.load %arg15[%c40, %c0_104] : memref<64x32xf32, #tpu.memory_space<vmem>>, vector<8x32xf32>
    tpu.vector_store %arg15[%c40, %c0_104], %445 {strides = array<i32>} : memref<64x32xf32, #tpu.memory_space<vmem>>, vector<8x32xf32>,
    %448 = arith.truncf %446 : vector<8x64xf32> to vector<8x64xbf16>
    %cst_105 = arith.constant dense<0.000000e+00> : vector<8x64xf32>
    %449 = tpu.matmul %448, %0, %cst_105 {dimension_numbers = #tpu.dot_dimension_numbers<[1], [0], [0], [1], [0, 0, 1, 1], [], []>} : vector<8x64xbf16>, vector<64x64xbf16>, vector<8x64xf32> -> vector<8x64xf32>
    %450 = vector.extract_strided_slice %32 {offsets = [48, 0], sizes = [8, 32], strides = [1, 1]} : vector<64x32xf32> to vector<8x32xf32>
    %451 = vector.extract_strided_slice %449 {offsets = [0, 0], sizes = [8, 32], strides = [1, 1]} : vector<8x64xf32> to vector<8x32xf32>
    %452 = arith.addf %450, %451 : vector<8x32xf32>
    %453 = vector.broadcast %7 : vector<1x32xf32> to vector<8x32xf32>
    %454 = arith.mulf %453, %390 : vector<8x32xf32>
    %455 = vector.broadcast %9 : vector<1x32xf32> to vector<8x32xf32>
    %456 = arith.mulf %455, %412 : vector<8x32xf32>
    %457 = arith.addf %454, %456 : vector<8x32xf32>
    %458 = vector.broadcast %8 : vector<1x32xf32> to vector<8x32xf32>
    %459 = arith.mulf %458, %395 : vector<8x32xf32>
    %460 = vector.broadcast %10 : vector<1x32xf32> to vector<8x32xf32>
    %461 = arith.mulf %460, %412 : vector<8x32xf32>
    %462 = arith.addf %459, %461 : vector<8x32xf32>
    %cst_106 = arith.constant 0.00999999977 : f32
    %463 = vector.broadcast %cst_106 : f32 to vector<8x32xf32>
    %464 = arith.addf %463, %457 : vector<8x32xf32>
    %465 = arith.addf %464, %462 : vector<8x32xf32>
    %466 = vector.broadcast %6 : vector<1x32xf32> to vector<8x32xf32>
    %467 = arith.mulf %407, %466 : vector<8x32xf32>
    %cst_107 = arith.constant 1.000000e+00 : f32
    %468 = vector.broadcast %cst_107 : f32 to vector<8x32xf32>
    %469 = arith.mulf %468, %452 : vector<8x32xf32>
    %470 = arith.addf %467, %469 : vector<8x32xf32>
    %471 = arith.mulf %465, %412 : vector<8x32xf32>
    %cst_108 = arith.constant 1.000000e+00 : f32
    %472 = vector.broadcast %cst_108 : f32 to vector<8x32xf32>
    %473 = arith.mulf %471, %472 : vector<8x32xf32>
    %474 = arith.subf %470, %473 : vector<8x32xf32>
    %475 = arith.subf %474, %465 : vector<8x32xf32>
    %cst_109 = arith.constant 0.000000e+00 : f32
    %476 = vector.broadcast %cst_109 : f32 to vector<8x32xf32>
    %477 = arith.cmpf ogt, %475, %476 : vector<8x32xf32>
    %478 = arith.extui %477 : vector<8x32xi1> to vector<8x32xi32>
    %479 = arith.sitofp %478 : vector<8x32xi32> to vector<8x32xf32>
    %480 = arith.truncf %479 : vector<8x32xf32> to vector<8x32xbf16>
    %cst_110 = arith.constant dense<0.000000e+00> : vector<8x32xf32>
    %481 = tpu.matmul %480, %1, %cst_110 {dimension_numbers = #tpu.dot_dimension_numbers<[1], [0], [0], [1], [0, 0, 1, 1], [], []>} : vector<8x32xbf16>, vector<32x32xbf16>, vector<8x32xf32> -> vector<8x32xf32>
    %482 = vector.extract_strided_slice %449 {offsets = [0, 32], sizes = [8, 32], strides = [1, 1]} : vector<8x64xf32> to vector<8x32xf32>
    %483 = arith.addf %481, %482 : vector<8x32xf32>
    %484 = vector.broadcast %18 : vector<1x32xf32> to vector<8x32xf32>
    %485 = arith.addf %483, %484 : vector<8x32xf32>
    %486 = vector.broadcast %14 : vector<1x32xf32> to vector<8x32xf32>
    %487 = arith.mulf %486, %423 : vector<8x32xf32>
    %488 = vector.broadcast %16 : vector<1x32xf32> to vector<8x32xf32>
    %489 = arith.mulf %488, %445 : vector<8x32xf32>
    %490 = arith.addf %487, %489 : vector<8x32xf32>
    %491 = vector.broadcast %15 : vector<1x32xf32> to vector<8x32xf32>
    %492 = arith.mulf %491, %428 : vector<8x32xf32>
    %493 = vector.broadcast %17 : vector<1x32xf32> to vector<8x32xf32>
    %494 = arith.mulf %493, %445 : vector<8x32xf32>
    %495 = arith.addf %492, %494 : vector<8x32xf32>
    %cst_111 = arith.constant 0.00999999977 : f32
    %496 = vector.broadcast %cst_111 : f32 to vector<8x32xf32>
    %497 = arith.addf %496, %490 : vector<8x32xf32>
    %498 = arith.addf %497, %495 : vector<8x32xf32>
    %499 = vector.broadcast %13 : vector<1x32xf32> to vector<8x32xf32>
    %500 = arith.mulf %440, %499 : vector<8x32xf32>
    %cst_112 = arith.constant 1.000000e+00 : f32
    %501 = vector.broadcast %cst_112 : f32 to vector<8x32xf32>
    %502 = arith.mulf %501, %485 : vector<8x32xf32>
    %503 = arith.addf %500, %502 : vector<8x32xf32>
    %504 = arith.mulf %498, %445 : vector<8x32xf32>
    %cst_113 = arith.constant 1.000000e+00 : f32
    %505 = vector.broadcast %cst_113 : f32 to vector<8x32xf32>
    %506 = arith.mulf %504, %505 : vector<8x32xf32>
    %507 = arith.subf %503, %506 : vector<8x32xf32>
    %508 = arith.subf %507, %498 : vector<8x32xf32>
    %cst_114 = arith.constant 0.000000e+00 : f32
    %509 = vector.broadcast %cst_114 : f32 to vector<8x32xf32>
    %510 = arith.cmpf ogt, %508, %509 : vector<8x32xf32>
    %511 = arith.extui %510 : vector<8x32xi1> to vector<8x32xi32>
    %512 = arith.sitofp %511 : vector<8x32xi32> to vector<8x32xf32>
    %513 = tpu.concatenate %479, %512 in 1 : vector<8x32xf32>, vector<8x32xf32> -> vector<8x64xf32>
    %c48 = arith.constant 48 : index
    %c0_115 = arith.constant 0 : index
    %514 = vector.load %arg15[%c48, %c0_115] : memref<64x32xf32, #tpu.memory_space<vmem>>, vector<8x32xf32>
    tpu.vector_store %arg15[%c48, %c0_115], %512 {strides = array<i32>} : memref<64x32xf32, #tpu.memory_space<vmem>>, vector<8x32xf32>,
    %515 = arith.truncf %513 : vector<8x64xf32> to vector<8x64xbf16>
    %cst_116 = arith.constant dense<0.000000e+00> : vector<8x64xf32>
    %516 = tpu.matmul %515, %0, %cst_116 {dimension_numbers = #tpu.dot_dimension_numbers<[1], [0], [0], [1], [0, 0, 1, 1], [], []>} : vector<8x64xbf16>, vector<64x64xbf16>, vector<8x64xf32> -> vector<8x64xf32>
    %517 = vector.extract_strided_slice %32 {offsets = [56, 0], sizes = [8, 32], strides = [1, 1]} : vector<64x32xf32> to vector<8x32xf32>
    %518 = vector.extract_strided_slice %516 {offsets = [0, 0], sizes = [8, 32], strides = [1, 1]} : vector<8x64xf32> to vector<8x32xf32>
    %519 = arith.addf %517, %518 : vector<8x32xf32>
    %520 = vector.broadcast %7 : vector<1x32xf32> to vector<8x32xf32>
    %521 = arith.mulf %520, %457 : vector<8x32xf32>
    %522 = vector.broadcast %9 : vector<1x32xf32> to vector<8x32xf32>
    %523 = arith.mulf %522, %479 : vector<8x32xf32>
    %524 = arith.addf %521, %523 : vector<8x32xf32>
    %525 = vector.broadcast %8 : vector<1x32xf32> to vector<8x32xf32>
    %526 = arith.mulf %525, %462 : vector<8x32xf32>
    %527 = vector.broadcast %10 : vector<1x32xf32> to vector<8x32xf32>
    %528 = arith.mulf %527, %479 : vector<8x32xf32>
    %529 = arith.addf %526, %528 : vector<8x32xf32>
    %cst_117 = arith.constant 0.00999999977 : f32
    %530 = vector.broadcast %cst_117 : f32 to vector<8x32xf32>
    %531 = arith.addf %530, %524 : vector<8x32xf32>
    %532 = arith.addf %531, %529 : vector<8x32xf32>
    %533 = vector.broadcast %6 : vector<1x32xf32> to vector<8x32xf32>
    %534 = arith.mulf %474, %533 : vector<8x32xf32>
    %cst_118 = arith.constant 1.000000e+00 : f32
    %535 = vector.broadcast %cst_118 : f32 to vector<8x32xf32>
    %536 = arith.mulf %535, %519 : vector<8x32xf32>
    %537 = arith.addf %534, %536 : vector<8x32xf32>
    %538 = arith.mulf %532, %479 : vector<8x32xf32>
    %cst_119 = arith.constant 1.000000e+00 : f32
    %539 = vector.broadcast %cst_119 : f32 to vector<8x32xf32>
    %540 = arith.mulf %538, %539 : vector<8x32xf32>
    %541 = arith.subf %537, %540 : vector<8x32xf32>
    %542 = arith.subf %541, %532 : vector<8x32xf32>
    %cst_120 = arith.constant 0.000000e+00 : f32
    %543 = vector.broadcast %cst_120 : f32 to vector<8x32xf32>
    %544 = arith.cmpf ogt, %542, %543 : vector<8x32xf32>
    %545 = arith.extui %544 : vector<8x32xi1> to vector<8x32xi32>
    %546 = arith.sitofp %545 : vector<8x32xi32> to vector<8x32xf32>
    %547 = arith.truncf %546 : vector<8x32xf32> to vector<8x32xbf16>
    %cst_121 = arith.constant dense<0.000000e+00> : vector<8x32xf32>
    %548 = tpu.matmul %547, %1, %cst_121 {dimension_numbers = #tpu.dot_dimension_numbers<[1], [0], [0], [1], [0, 0, 1, 1], [], []>} : vector<8x32xbf16>, vector<32x32xbf16>, vector<8x32xf32> -> vector<8x32xf32>
    %549 = vector.extract_strided_slice %516 {offsets = [0, 32], sizes = [8, 32], strides = [1, 1]} : vector<8x64xf32> to vector<8x32xf32>
    %550 = arith.addf %548, %549 : vector<8x32xf32>
    %551 = vector.broadcast %18 : vector<1x32xf32> to vector<8x32xf32>
    %552 = arith.addf %550, %551 : vector<8x32xf32>
    %553 = vector.broadcast %14 : vector<1x32xf32> to vector<8x32xf32>
    %554 = arith.mulf %553, %490 : vector<8x32xf32>
    %555 = vector.broadcast %16 : vector<1x32xf32> to vector<8x32xf32>
    %556 = arith.mulf %555, %512 : vector<8x32xf32>
    %557 = arith.addf %554, %556 : vector<8x32xf32>
    %558 = vector.broadcast %15 : vector<1x32xf32> to vector<8x32xf32>
    %559 = arith.mulf %558, %495 : vector<8x32xf32>
    %560 = vector.broadcast %17 : vector<1x32xf32> to vector<8x32xf32>
    %561 = arith.mulf %560, %512 : vector<8x32xf32>
    %562 = arith.addf %559, %561 : vector<8x32xf32>
    %cst_122 = arith.constant 0.00999999977 : f32
    %563 = vector.broadcast %cst_122 : f32 to vector<8x32xf32>
    %564 = arith.addf %563, %557 : vector<8x32xf32>
    %565 = arith.addf %564, %562 : vector<8x32xf32>
    %566 = vector.broadcast %13 : vector<1x32xf32> to vector<8x32xf32>
    %567 = arith.mulf %507, %566 : vector<8x32xf32>
    %cst_123 = arith.constant 1.000000e+00 : f32
    %568 = vector.broadcast %cst_123 : f32 to vector<8x32xf32>
    %569 = arith.mulf %568, %552 : vector<8x32xf32>
    %570 = arith.addf %567, %569 : vector<8x32xf32>
    %571 = arith.mulf %565, %512 : vector<8x32xf32>
    %cst_124 = arith.constant 1.000000e+00 : f32
    %572 = vector.broadcast %cst_124 : f32 to vector<8x32xf32>
    %573 = arith.mulf %571, %572 : vector<8x32xf32>
    %574 = arith.subf %570, %573 : vector<8x32xf32>
    %575 = arith.subf %574, %565 : vector<8x32xf32>
    %cst_125 = arith.constant 0.000000e+00 : f32
    %576 = vector.broadcast %cst_125 : f32 to vector<8x32xf32>
    %577 = arith.cmpf ogt, %575, %576 : vector<8x32xf32>
    %578 = arith.extui %577 : vector<8x32xi1> to vector<8x32xi32>
    %579 = arith.sitofp %578 : vector<8x32xi32> to vector<8x32xf32>
    %c56 = arith.constant 56 : index
    %c0_126 = arith.constant 0 : index
    %580 = vector.load %arg15[%c56, %c0_126] : memref<64x32xf32, #tpu.memory_space<vmem>>, vector<8x32xf32>
    tpu.vector_store %arg15[%c56, %c0_126], %579 {strides = array<i32>} : memref<64x32xf32, #tpu.memory_space<vmem>>, vector<8x32xf32>,
    %c0_127 = arith.constant 0 : index
    %c0_128 = arith.constant 0 : index
    %581 = vector.load %arg15[%c0_127, %c0_128] : memref<64x32xf32, #tpu.memory_space<vmem>>, vector<64x32xf32>
    %582 = arith.truncf %581 : vector<64x32xf32> to vector<64x32xbf16>
    %cst_129 = arith.constant dense<0.000000e+00> : vector<64x32xf32>
    %583 = tpu.matmul %582, %2, %cst_129 {dimension_numbers = #tpu.dot_dimension_numbers<[1], [0], [0], [1], [0, 0, 1, 1], [], []>} : vector<64x32xbf16>, vector<32x32xbf16>, vector<64x32xf32> -> vector<64x32xf32>
    %584 = vector.broadcast %25 : vector<1x32xf32> to vector<64x32xf32>
    %585 = arith.addf %583, %584 : vector<64x32xf32>
    %586 = vector.extract_strided_slice %585 {offsets = [0, 0], sizes = [8, 32], strides = [1, 1]} : vector<64x32xf32> to vector<8x32xf32>
    %587 = vector.broadcast %21 : vector<1x32xf32> to vector<8x32xf32>
    %588 = arith.mulf %587, %43 : vector<8x32xf32>
    %589 = vector.broadcast %23 : vector<1x32xf32> to vector<8x32xf32>
    %590 = arith.mulf %589, %38 : vector<8x32xf32>
    %591 = arith.addf %588, %590 : vector<8x32xf32>
    %592 = vector.broadcast %22 : vector<1x32xf32> to vector<8x32xf32>
    %593 = arith.mulf %592, %44 : vector<8x32xf32>
    %594 = vector.broadcast %24 : vector<1x32xf32> to vector<8x32xf32>
    %595 = arith.mulf %594, %38 : vector<8x32xf32>
    %596 = arith.addf %593, %595 : vector<8x32xf32>
    %cst_130 = arith.constant 0.00999999977 : f32
    %597 = vector.broadcast %cst_130 : f32 to vector<8x32xf32>
    %598 = arith.addf %597, %591 : vector<8x32xf32>
    %599 = arith.addf %598, %596 : vector<8x32xf32>
    %600 = vector.broadcast %20 : vector<1x32xf32> to vector<8x32xf32>
    %601 = arith.mulf %37, %600 : vector<8x32xf32>
    %cst_131 = arith.constant 1.000000e+00 : f32
    %602 = vector.broadcast %cst_131 : f32 to vector<8x32xf32>
    %603 = arith.mulf %602, %586 : vector<8x32xf32>
    %604 = arith.addf %601, %603 : vector<8x32xf32>
    %605 = arith.mulf %599, %38 : vector<8x32xf32>
    %cst_132 = arith.constant 1.000000e+00 : f32
    %606 = vector.broadcast %cst_132 : f32 to vector<8x32xf32>
    %607 = arith.mulf %605, %606 : vector<8x32xf32>
    %608 = arith.subf %604, %607 : vector<8x32xf32>
    %609 = arith.subf %608, %599 : vector<8x32xf32>
    %cst_133 = arith.constant 0.000000e+00 : f32
    %610 = vector.broadcast %cst_133 : f32 to vector<8x32xf32>
    %611 = arith.cmpf ogt, %609, %610 : vector<8x32xf32>
    %612 = arith.extui %611 : vector<8x32xi1> to vector<8x32xi32>
    %613 = arith.sitofp %612 : vector<8x32xi32> to vector<8x32xf32>
    %614 = vector.extract_strided_slice %585 {offsets = [8, 0], sizes = [8, 32], strides = [1, 1]} : vector<64x32xf32> to vector<8x32xf32>
    %615 = vector.broadcast %21 : vector<1x32xf32> to vector<8x32xf32>
    %616 = arith.mulf %615, %591 : vector<8x32xf32>
    %617 = vector.broadcast %23 : vector<1x32xf32> to vector<8x32xf32>
    %618 = arith.mulf %617, %613 : vector<8x32xf32>
    %619 = arith.addf %616, %618 : vector<8x32xf32>
    %620 = vector.broadcast %22 : vector<1x32xf32> to vector<8x32xf32>
    %621 = arith.mulf %620, %596 : vector<8x32xf32>
    %622 = vector.broadcast %24 : vector<1x32xf32> to vector<8x32xf32>
    %623 = arith.mulf %622, %613 : vector<8x32xf32>
    %624 = arith.addf %621, %623 : vector<8x32xf32>
    %cst_134 = arith.constant 0.00999999977 : f32
    %625 = vector.broadcast %cst_134 : f32 to vector<8x32xf32>
    %626 = arith.addf %625, %619 : vector<8x32xf32>
    %627 = arith.addf %626, %624 : vector<8x32xf32>
    %628 = vector.broadcast %20 : vector<1x32xf32> to vector<8x32xf32>
    %629 = arith.mulf %608, %628 : vector<8x32xf32>
    %cst_135 = arith.constant 1.000000e+00 : f32
    %630 = vector.broadcast %cst_135 : f32 to vector<8x32xf32>
    %631 = arith.mulf %630, %614 : vector<8x32xf32>
    %632 = arith.addf %629, %631 : vector<8x32xf32>
    %633 = arith.mulf %627, %613 : vector<8x32xf32>
    %cst_136 = arith.constant 1.000000e+00 : f32
    %634 = vector.broadcast %cst_136 : f32 to vector<8x32xf32>
    %635 = arith.mulf %633, %634 : vector<8x32xf32>
    %636 = arith.subf %632, %635 : vector<8x32xf32>
    %637 = arith.subf %636, %627 : vector<8x32xf32>
    %cst_137 = arith.constant 0.000000e+00 : f32
    %638 = vector.broadcast %cst_137 : f32 to vector<8x32xf32>
    %639 = arith.cmpf ogt, %637, %638 : vector<8x32xf32>
    %640 = arith.extui %639 : vector<8x32xi1> to vector<8x32xi32>
    %641 = arith.sitofp %640 : vector<8x32xi32> to vector<8x32xf32>
    %642 = vector.extract_strided_slice %585 {offsets = [16, 0], sizes = [8, 32], strides = [1, 1]} : vector<64x32xf32> to vector<8x32xf32>
    %643 = vector.broadcast %21 : vector<1x32xf32> to vector<8x32xf32>
    %644 = arith.mulf %643, %619 : vector<8x32xf32>
    %645 = vector.broadcast %23 : vector<1x32xf32> to vector<8x32xf32>
    %646 = arith.mulf %645, %641 : vector<8x32xf32>
    %647 = arith.addf %644, %646 : vector<8x32xf32>
    %648 = vector.broadcast %22 : vector<1x32xf32> to vector<8x32xf32>
    %649 = arith.mulf %648, %624 : vector<8x32xf32>
    %650 = vector.broadcast %24 : vector<1x32xf32> to vector<8x32xf32>
    %651 = arith.mulf %650, %641 : vector<8x32xf32>
    %652 = arith.addf %649, %651 : vector<8x32xf32>
    %cst_138 = arith.constant 0.00999999977 : f32
    %653 = vector.broadcast %cst_138 : f32 to vector<8x32xf32>
    %654 = arith.addf %653, %647 : vector<8x32xf32>
    %655 = arith.addf %654, %652 : vector<8x32xf32>
    %656 = vector.broadcast %20 : vector<1x32xf32> to vector<8x32xf32>
    %657 = arith.mulf %636, %656 : vector<8x32xf32>
    %cst_139 = arith.constant 1.000000e+00 : f32
    %658 = vector.broadcast %cst_139 : f32 to vector<8x32xf32>
    %659 = arith.mulf %658, %642 : vector<8x32xf32>
    %660 = arith.addf %657, %659 : vector<8x32xf32>
    %661 = arith.mulf %655, %641 : vector<8x32xf32>
    %cst_140 = arith.constant 1.000000e+00 : f32
    %662 = vector.broadcast %cst_140 : f32 to vector<8x32xf32>
    %663 = arith.mulf %661, %662 : vector<8x32xf32>
    %664 = arith.subf %660, %663 : vector<8x32xf32>
    %665 = arith.subf %664, %655 : vector<8x32xf32>
    %cst_141 = arith.constant 0.000000e+00 : f32
    %666 = vector.broadcast %cst_141 : f32 to vector<8x32xf32>
    %667 = arith.cmpf ogt, %665, %666 : vector<8x32xf32>
    %668 = arith.extui %667 : vector<8x32xi1> to vector<8x32xi32>
    %669 = arith.sitofp %668 : vector<8x32xi32> to vector<8x32xf32>
    %670 = vector.extract_strided_slice %585 {offsets = [24, 0], sizes = [8, 32], strides = [1, 1]} : vector<64x32xf32> to vector<8x32xf32>
    %671 = vector.broadcast %21 : vector<1x32xf32> to vector<8x32xf32>
    %672 = arith.mulf %671, %647 : vector<8x32xf32>
    %673 = vector.broadcast %23 : vector<1x32xf32> to vector<8x32xf32>
    %674 = arith.mulf %673, %669 : vector<8x32xf32>
    %675 = arith.addf %672, %674 : vector<8x32xf32>
    %676 = vector.broadcast %22 : vector<1x32xf32> to vector<8x32xf32>
    %677 = arith.mulf %676, %652 : vector<8x32xf32>
    %678 = vector.broadcast %24 : vector<1x32xf32> to vector<8x32xf32>
    %679 = arith.mulf %678, %669 : vector<8x32xf32>
    %680 = arith.addf %677, %679 : vector<8x32xf32>
    %cst_142 = arith.constant 0.00999999977 : f32
    %681 = vector.broadcast %cst_142 : f32 to vector<8x32xf32>
    %682 = arith.addf %681, %675 : vector<8x32xf32>
    %683 = arith.addf %682, %680 : vector<8x32xf32>
    %684 = vector.broadcast %20 : vector<1x32xf32> to vector<8x32xf32>
    %685 = arith.mulf %664, %684 : vector<8x32xf32>
    %cst_143 = arith.constant 1.000000e+00 : f32
    %686 = vector.broadcast %cst_143 : f32 to vector<8x32xf32>
    %687 = arith.mulf %686, %670 : vector<8x32xf32>
    %688 = arith.addf %685, %687 : vector<8x32xf32>
    %689 = arith.mulf %683, %669 : vector<8x32xf32>
    %cst_144 = arith.constant 1.000000e+00 : f32
    %690 = vector.broadcast %cst_144 : f32 to vector<8x32xf32>
    %691 = arith.mulf %689, %690 : vector<8x32xf32>
    %692 = arith.subf %688, %691 : vector<8x32xf32>
    %693 = arith.subf %692, %683 : vector<8x32xf32>
    %cst_145 = arith.constant 0.000000e+00 : f32
    %694 = vector.broadcast %cst_145 : f32 to vector<8x32xf32>
    %695 = arith.cmpf ogt, %693, %694 : vector<8x32xf32>
    %696 = arith.extui %695 : vector<8x32xi1> to vector<8x32xi32>
    %697 = arith.sitofp %696 : vector<8x32xi32> to vector<8x32xf32>
    %698 = vector.extract_strided_slice %585 {offsets = [32, 0], sizes = [8, 32], strides = [1, 1]} : vector<64x32xf32> to vector<8x32xf32>
    %699 = vector.broadcast %21 : vector<1x32xf32> to vector<8x32xf32>
    %700 = arith.mulf %699, %675 : vector<8x32xf32>
    %701 = vector.broadcast %23 : vector<1x32xf32> to vector<8x32xf32>
    %702 = arith.mulf %701, %697 : vector<8x32xf32>
    %703 = arith.addf %700, %702 : vector<8x32xf32>
    %704 = vector.broadcast %22 : vector<1x32xf32> to vector<8x32xf32>
    %705 = arith.mulf %704, %680 : vector<8x32xf32>
    %706 = vector.broadcast %24 : vector<1x32xf32> to vector<8x32xf32>
    %707 = arith.mulf %706, %697 : vector<8x32xf32>
    %708 = arith.addf %705, %707 : vector<8x32xf32>
    %cst_146 = arith.constant 0.00999999977 : f32
    %709 = vector.broadcast %cst_146 : f32 to vector<8x32xf32>
    %710 = arith.addf %709, %703 : vector<8x32xf32>
    %711 = arith.addf %710, %708 : vector<8x32xf32>
    %712 = vector.broadcast %20 : vector<1x32xf32> to vector<8x32xf32>
    %713 = arith.mulf %692, %712 : vector<8x32xf32>
    %cst_147 = arith.constant 1.000000e+00 : f32
    %714 = vector.broadcast %cst_147 : f32 to vector<8x32xf32>
    %715 = arith.mulf %714, %698 : vector<8x32xf32>
    %716 = arith.addf %713, %715 : vector<8x32xf32>
    %717 = arith.mulf %711, %697 : vector<8x32xf32>
    %cst_148 = arith.constant 1.000000e+00 : f32
    %718 = vector.broadcast %cst_148 : f32 to vector<8x32xf32>
    %719 = arith.mulf %717, %718 : vector<8x32xf32>
    %720 = arith.subf %716, %719 : vector<8x32xf32>
    %721 = arith.subf %720, %711 : vector<8x32xf32>
    %cst_149 = arith.constant 0.000000e+00 : f32
    %722 = vector.broadcast %cst_149 : f32 to vector<8x32xf32>
    %723 = arith.cmpf ogt, %721, %722 : vector<8x32xf32>
    %724 = arith.extui %723 : vector<8x32xi1> to vector<8x32xi32>
    %725 = arith.sitofp %724 : vector<8x32xi32> to vector<8x32xf32>
    %726 = vector.extract_strided_slice %585 {offsets = [40, 0], sizes = [8, 32], strides = [1, 1]} : vector<64x32xf32> to vector<8x32xf32>
    %727 = vector.broadcast %21 : vector<1x32xf32> to vector<8x32xf32>
    %728 = arith.mulf %727, %703 : vector<8x32xf32>
    %729 = vector.broadcast %23 : vector<1x32xf32> to vector<8x32xf32>
    %730 = arith.mulf %729, %725 : vector<8x32xf32>
    %731 = arith.addf %728, %730 : vector<8x32xf32>
    %732 = vector.broadcast %22 : vector<1x32xf32> to vector<8x32xf32>
    %733 = arith.mulf %732, %708 : vector<8x32xf32>
    %734 = vector.broadcast %24 : vector<1x32xf32> to vector<8x32xf32>
    %735 = arith.mulf %734, %725 : vector<8x32xf32>
    %736 = arith.addf %733, %735 : vector<8x32xf32>
    %cst_150 = arith.constant 0.00999999977 : f32
    %737 = vector.broadcast %cst_150 : f32 to vector<8x32xf32>
    %738 = arith.addf %737, %731 : vector<8x32xf32>
    %739 = arith.addf %738, %736 : vector<8x32xf32>
    %740 = vector.broadcast %20 : vector<1x32xf32> to vector<8x32xf32>
    %741 = arith.mulf %720, %740 : vector<8x32xf32>
    %cst_151 = arith.constant 1.000000e+00 : f32
    %742 = vector.broadcast %cst_151 : f32 to vector<8x32xf32>
    %743 = arith.mulf %742, %726 : vector<8x32xf32>
    %744 = arith.addf %741, %743 : vector<8x32xf32>
    %745 = arith.mulf %739, %725 : vector<8x32xf32>
    %cst_152 = arith.constant 1.000000e+00 : f32
    %746 = vector.broadcast %cst_152 : f32 to vector<8x32xf32>
    %747 = arith.mulf %745, %746 : vector<8x32xf32>
    %748 = arith.subf %744, %747 : vector<8x32xf32>
    %749 = arith.subf %748, %739 : vector<8x32xf32>
    %cst_153 = arith.constant 0.000000e+00 : f32
    %750 = vector.broadcast %cst_153 : f32 to vector<8x32xf32>
    %751 = arith.cmpf ogt, %749, %750 : vector<8x32xf32>
    %752 = arith.extui %751 : vector<8x32xi1> to vector<8x32xi32>
    %753 = arith.sitofp %752 : vector<8x32xi32> to vector<8x32xf32>
    %754 = vector.extract_strided_slice %585 {offsets = [48, 0], sizes = [8, 32], strides = [1, 1]} : vector<64x32xf32> to vector<8x32xf32>
    %755 = vector.broadcast %21 : vector<1x32xf32> to vector<8x32xf32>
    %756 = arith.mulf %755, %731 : vector<8x32xf32>
    %757 = vector.broadcast %23 : vector<1x32xf32> to vector<8x32xf32>
    %758 = arith.mulf %757, %753 : vector<8x32xf32>
    %759 = arith.addf %756, %758 : vector<8x32xf32>
    %760 = vector.broadcast %22 : vector<1x32xf32> to vector<8x32xf32>
    %761 = arith.mulf %760, %736 : vector<8x32xf32>
    %762 = vector.broadcast %24 : vector<1x32xf32> to vector<8x32xf32>
    %763 = arith.mulf %762, %753 : vector<8x32xf32>
    %764 = arith.addf %761, %763 : vector<8x32xf32>
    %cst_154 = arith.constant 0.00999999977 : f32
    %765 = vector.broadcast %cst_154 : f32 to vector<8x32xf32>
    %766 = arith.addf %765, %759 : vector<8x32xf32>
    %767 = arith.addf %766, %764 : vector<8x32xf32>
    %768 = vector.broadcast %20 : vector<1x32xf32> to vector<8x32xf32>
    %769 = arith.mulf %748, %768 : vector<8x32xf32>
    %cst_155 = arith.constant 1.000000e+00 : f32
    %770 = vector.broadcast %cst_155 : f32 to vector<8x32xf32>
    %771 = arith.mulf %770, %754 : vector<8x32xf32>
    %772 = arith.addf %769, %771 : vector<8x32xf32>
    %773 = arith.mulf %767, %753 : vector<8x32xf32>
    %cst_156 = arith.constant 1.000000e+00 : f32
    %774 = vector.broadcast %cst_156 : f32 to vector<8x32xf32>
    %775 = arith.mulf %773, %774 : vector<8x32xf32>
    %776 = arith.subf %772, %775 : vector<8x32xf32>
    %777 = arith.subf %776, %767 : vector<8x32xf32>
    %cst_157 = arith.constant 0.000000e+00 : f32
    %778 = vector.broadcast %cst_157 : f32 to vector<8x32xf32>
    %779 = arith.cmpf ogt, %777, %778 : vector<8x32xf32>
    %780 = arith.extui %779 : vector<8x32xi1> to vector<8x32xi32>
    %781 = arith.sitofp %780 : vector<8x32xi32> to vector<8x32xf32>
    %782 = vector.extract_strided_slice %585 {offsets = [56, 0], sizes = [8, 32], strides = [1, 1]} : vector<64x32xf32> to vector<8x32xf32>
    %783 = vector.broadcast %21 : vector<1x32xf32> to vector<8x32xf32>
    %784 = arith.mulf %783, %759 : vector<8x32xf32>
    %785 = vector.broadcast %23 : vector<1x32xf32> to vector<8x32xf32>
    %786 = arith.mulf %785, %781 : vector<8x32xf32>
    %787 = arith.addf %784, %786 : vector<8x32xf32>
    %788 = vector.broadcast %22 : vector<1x32xf32> to vector<8x32xf32>
    %789 = arith.mulf %788, %764 : vector<8x32xf32>
    %790 = vector.broadcast %24 : vector<1x32xf32> to vector<8x32xf32>
    %791 = arith.mulf %790, %781 : vector<8x32xf32>
    %792 = arith.addf %789, %791 : vector<8x32xf32>
    %cst_158 = arith.constant 0.00999999977 : f32
    %793 = vector.broadcast %cst_158 : f32 to vector<8x32xf32>
    %794 = arith.addf %793, %787 : vector<8x32xf32>
    %795 = arith.addf %794, %792 : vector<8x32xf32>
    %796 = vector.broadcast %20 : vector<1x32xf32> to vector<8x32xf32>
    %797 = arith.mulf %776, %796 : vector<8x32xf32>
    %cst_159 = arith.constant 1.000000e+00 : f32
    %798 = vector.broadcast %cst_159 : f32 to vector<8x32xf32>
    %799 = arith.mulf %798, %782 : vector<8x32xf32>
    %800 = arith.addf %797, %799 : vector<8x32xf32>
    %801 = arith.mulf %795, %781 : vector<8x32xf32>
    %cst_160 = arith.constant 1.000000e+00 : f32
    %802 = vector.broadcast %cst_160 : f32 to vector<8x32xf32>
    %803 = arith.mulf %801, %802 : vector<8x32xf32>
    %804 = arith.subf %800, %803 : vector<8x32xf32>
    %805 = arith.subf %804, %795 : vector<8x32xf32>
    %cst_161 = arith.constant 0.000000e+00 : f32
    %806 = vector.broadcast %cst_161 : f32 to vector<8x32xf32>
    %807 = arith.cmpf ogt, %805, %806 : vector<8x32xf32>
    %808 = arith.extui %807 : vector<8x32xi1> to vector<8x32xi32>
    %809 = arith.sitofp %808 : vector<8x32xi32> to vector<8x32xf32>
    %810 = arith.truncf %809 : vector<8x32xf32> to vector<8x32xbf16>
    %cst_162 = arith.constant dense<0.000000e+00> : vector<8x128xf32>
    %811 = tpu.matmul %810, %3, %cst_162 {dimension_numbers = #tpu.dot_dimension_numbers<[1], [0], [0], [1], [0, 0, 1, 1], [], []>} : vector<8x32xbf16>, vector<32x128xbf16>, vector<8x128xf32> -> vector<8x128xf32>
    %812 = vector.broadcast %4 : vector<1x128xf32> to vector<8x128xf32>
    %813 = arith.addf %811, %812 : vector<8x128xf32>
    %cst_163 = arith.constant 0.000000e+00 : f32
    %814 = vector.broadcast %cst_163 : f32 to vector<8x128xf32>
    %815 = arith.subf %814, %813 : vector<8x128xf32>
    %816 = math.exp %815 : vector<8x128xf32>
    %cst_164 = arith.constant 1.000000e+00 : f32
    %817 = vector.broadcast %cst_164 : f32 to vector<8x128xf32>
    %818 = arith.addf %817, %816 : vector<8x128xf32>
    %cst_165 = arith.constant 1.000000e+00 : f32
    %819 = vector.broadcast %cst_165 : f32 to vector<8x128xf32>
    %820 = arith.divf %819, %818 : vector<8x128xf32>
    %c0_166 = arith.constant 0 : index
    %c0_167 = arith.constant 0 : index
    %821 = vector.load %arg14[%c0_166, %c0_167] : memref<8x128xf32, #tpu.memory_space<vmem>>, vector<8x128xf32>
    tpu.vector_store %arg14[%c0_166, %c0_167], %820 {strides = array<i32>} : memref<8x128xf32, #tpu.memory_space<vmem>>, vector<8x128xf32>,
    return
  }
  func.func @transform_0(%arg0: i32) -> (i32, i32, i32) {
    %c0_i32 = arith.constant 0 : i32
    %c0_i32_0 = arith.constant 0 : i32
    %c0_i32_1 = arith.constant 0 : i32
    return %c0_i32, %arg0, %c0_i32_0 : i32, i32, i32
  }
  func.func @transform_1(%arg0: i32) -> (i32, i32) {
    %c0_i32 = arith.constant 0 : i32
    %c0_i32_0 = arith.constant 0 : i32
    %c0_i32_1 = arith.constant 0 : i32
    return %c0_i32, %c0_i32_0 : i32, i32
  }
  func.func @transform_2(%arg0: i32) -> (i32, i32) {
    %c0_i32 = arith.constant 0 : i32
    %c0_i32_0 = arith.constant 0 : i32
    %c0_i32_1 = arith.constant 0 : i32
    return %c0_i32, %c0_i32_0 : i32, i32
  }
  func.func @transform_3(%arg0: i32) -> (i32, i32) {
    %c0_i32 = arith.constant 0 : i32
    %c0_i32_0 = arith.constant 0 : i32
    %c0_i32_1 = arith.constant 0 : i32
    return %c0_i32, %c0_i32_0 : i32, i32
  }
  func.func @transform_4(%arg0: i32) -> (i32, i32) {
    %c0_i32 = arith.constant 0 : i32
    %c0_i32_0 = arith.constant 0 : i32
    %c0_i32_1 = arith.constant 0 : i32
    return %c0_i32, %c0_i32_0 : i32, i32
  }
  func.func @transform_5(%arg0: i32) -> (i32, i32) {
    %c0_i32 = arith.constant 0 : i32
    %c0_i32_0 = arith.constant 0 : i32
    %c0_i32_1 = arith.constant 0 : i32
    return %c0_i32, %c0_i32_0 : i32, i32
  }
  func.func @transform_6(%arg0: i32) -> (i32, i32) {
    %c0_i32 = arith.constant 0 : i32
    %c0_i32_0 = arith.constant 0 : i32
    %c0_i32_1 = arith.constant 0 : i32
    return %c0_i32, %c0_i32_0 : i32, i32
  }
  func.func @transform_7(%arg0: i32) -> (i32, i32) {
    %c0_i32 = arith.constant 0 : i32
    %c0_i32_0 = arith.constant 0 : i32
    %c0_i32_1 = arith.constant 0 : i32
    return %c0_i32, %c0_i32_0 : i32, i32
  }
  func.func @transform_8(%arg0: i32) -> (i32, i32) {
    %c0_i32 = arith.constant 0 : i32
    %c0_i32_0 = arith.constant 0 : i32
    %c0_i32_1 = arith.constant 0 : i32
    return %c0_i32, %c0_i32_0 : i32, i32
  }
  func.func @transform_9(%arg0: i32) -> (i32, i32) {
    %c0_i32 = arith.constant 0 : i32
    %c0_i32_0 = arith.constant 0 : i32
    %c0_i32_1 = arith.constant 0 : i32
    return %c0_i32, %c0_i32_0 : i32, i32
  }
  func.func @transform_10(%arg0: i32) -> (i32, i32) {
    %c0_i32 = arith.constant 0 : i32
    %c0_i32_0 = arith.constant 0 : i32
    return %arg0, %c0_i32 : i32, i32
  }
  func.func @transform_11(%arg0: i32) -> (i32, i32) {
    %c0_i32 = arith.constant 0 : i32
    %c0_i32_0 = arith.constant 0 : i32
    return %arg0, %c0_i32 : i32, i32
  }
  func.func @transform_12(%arg0: i32) -> (i32, i32) {
    %c0_i32 = arith.constant 0 : i32
    %c0_i32_0 = arith.constant 0 : i32
    return %arg0, %c0_i32 : i32, i32
  }
  func.func @transform_13(%arg0: i32) -> (i32, i32) {
    %c0_i32 = arith.constant 0 : i32
    %c0_i32_0 = arith.constant 0 : i32
    return %arg0, %c0_i32 : i32, i32
  }
}

</mosaic_0001>

<bundles_post_ra>
// kernel: rhythm_dexat_forward.1
= control target key start
LH: loop header
LB: loop body
LE: loop exit
PB: predicated region body
PF: predicated region fallthrough
CT: control target
= control target key end

     0   :  { %vm96_vm0 = vcmask 1043456   ;;  %s1169_s29 = smov 32   ;;  %vm83_vm1 = vcmask 64512   ;;  %vm136_vm2 = vcmask 261120   ;;  %vm163_vm3 = vcmask 523264   ;;  %s1716_s11 = inlined_call_operand.vmem [shape: f32[8,32], index: 11, kind: input, shape index: {}]   ;;  %s1717_s1 = inlined_call_operand.vmem [shape: bf16[8,32], index: 1, kind: input, shape index: {}]   ;;  %s1718_s0 = inlined_call_operand.vmem [shape: f32[8,8,8], index: 0, kind: input, shape index: {}]   ;;  %s1719_s2 = inlined_call_operand.vmem [shape: bf16[64,64], index: 2, kind: input, shape index: {}]   ;;  %s1720_s10 = inlined_call_operand.vmem [shape: f32[8,32], index: 10, kind: input, shape index: {}]   ;;  %s1721_s3 = inlined_call_operand.vmem [shape: bf16[32,32], index: 3, kind: input, shape index: {}]   ;;  %s1722_s7 = inlined_call_operand.vmem [shape: f32[6,32], index: 7, kind: input, shape index: {}]   ;;  %s1723_s8 = inlined_call_operand.vmem [shape: f32[6,32], index: 8, kind: input, shape index: {}]   ;;  %s1724_s4 = inlined_call_operand.vmem [shape: bf16[32,32], index: 4, kind: input, shape index: {}]   ;;  %s1725_s9 = inlined_call_operand.vmem [shape: f32[6,32], index: 9, kind: input, shape index: {}]   ;;  %s1726_s12 = inlined_call_operand.vmem [shape: f32[8,32], index: 12, kind: input, shape index: {}]   ;;  %s1727_s6 = inlined_call_operand.vmem [shape: f32[1,128], index: 6, kind: input, shape index: {}]   ;;  %s1728_s5 = inlined_call_operand.vmem [shape: bf16[32,128], index: 5, kind: input, shape index: {}]   ;;  %s1729_s13 = inlined_call_operand.vmem [shape: f32[8,128], index: 13, kind: output, shape index: {}]  }
   0x1   :  { %v1245_v0 = vld [vmem:[%s1716_s11] sm:$0xff]  ;;  %v71_v3 = vld [vmem:[%s1718_s0 + $0x10] sm:$0xff]  ;;  %v72_v4 = vld [vmem:[%s1718_s0 + $0x18] sm:$0xff]  ;;  %v1171_v52 = vmov 0.0  }
   0x2   :  { %v81_v1 = vld [vmem:[%s1717_s1] sm:$0xf]  ;;  %133 = vrot.lane.b32.xlu0 %v1245_v0, %s1169_s29  ;;  %v78_v5 = vpack.c.bf16 %v72_v4, %v71_v3  ;;  %v1261_v6 = vld [vmem:[%s1719_s2 + $0x18] sm:$0xff]  ;;  %v1270_v8 = vld [vmem:[%s1719_s2 + $0x10] sm:$0xff] }
   0x3   :  { %v98_v2 = vsel %vm96_vm0, %v81_v1, 0  ;;  %v69_v7 = vld [vmem:[%s1718_s0] sm:$0xff]  ;;  %v70_v9 = vld [vmem:[%s1718_s0 + $0x8] sm:$0xff]  ;;  %v76_v3 = vld [vmem:[%s1718_s0 + $0x38] sm:$0xff] }
   0x4   :  { %1159 = vmatpush.bf16.msra.mxu1 %v98_v2  ;;  %107 = vmatpush.bf16.msra.mxu0 %v98_v2  ;;  %v77_v10 = vpack.c.bf16 %v70_v9, %v69_v7  ;;  %v1283_v11 = vld [vmem:[%s1719_s2 + $0x8] sm:$0xff]  ;;  %v1291_v12 = vld [vmem:[%s1719_s2] sm:$0xff] }
   0x5   :  { %1160 = vmatpush.bf16.msra.mxu3 %v98_v2  ;;  %v73_v13 = vld [vmem:[%s1718_s0 + $0x20] sm:$0xff]  ;;  %v74_v14 = vld [vmem:[%s1718_s0 + $0x28] sm:$0xff]  ;;  %v75_v2 = vld [vmem:[%s1718_s0 + $0x30] sm:$0xff] }
   0x6   :  { %v79_v15 = vpack.c.bf16 %v74_v14, %v73_v13  ;;  %v129_v16 = vld [vmem:[%s1720_s10] sm:$0xff]  ;;  %v1321_v22 = vld [vmem:[%s1721_s3 + $0x8] sm:$0xff]  ;;  %v80_v4 = vpack.c.bf16 %v76_v3, %v75_v2 }
   0x7   :  { %1061 = vmatmul.msk.bf16.vlgmr.msra.gmra.mxu1 %vm83_vm1, %v78_v5  ;;  %1060 = vmatmul.msk.bf16.vlgmr.msra.gmra.mxu0 %vm83_vm1, %v77_v10  ;;  %v1328_v23 = vld [vmem:[%s1721_s3] sm:$0xff]  ;;  %s1170_s3 = smov 96  }
   0x8   :  { %171 = vmatpush.bf16.msrb.mxu1 %v1261_v6  ;;  %662 = vmatpush.bf16.msrb.mxu0 %v1261_v6  ;;  %v66_v24 = vld [vmem:[%s1722_s7] sm:$0x3f] }
   0x9   :  { %272 = vmatpush.bf16.msrb.mxu3 %v1261_v6  ;;  %228 = vmatpush.bf16.msra.mxu2 %v1321_v22  ;;  %v1336_v25 = vperm.slane %v66_v24, 3  ;;  %v1338_v26 = vperm.slane %v66_v24, 1  ;;  %v1345_v30 = vperm.slane %v66_v24, 2  ;;  %v1347_v31 = vperm.slane %v66_v24, 4  ;;  %v67_v62 = vld [vmem:[%s1723_s8] sm:$0x3f] }
   0xa   :  { %v1353_v38 = vperm.slane %v66_v24, 5  ;;  %v1355_v39 = vperm.slane %v66_v24, 0  ;;  %v1390_v63 = vperm.slane %v67_v62, 1  ;;  %v1392_v1 = vperm.slane %v67_v62, 3  ;;  %1063 = vmatmul.msk.bf16.vlgmr.msra.gmra.mxu3 %vm83_vm1, %v80_v4 }
   0xb   :  { %v184_v28 = vmul.f32 %v1336_v25, %v129_v16  ;;  %v182_v29 = vmul.f32 0.0, %v1338_v26  ;;  %v187_v33 = vmul.f32 0.018, %v1345_v30  ;;  %v189_v34 = vmul.f32 %v1347_v31, %v129_v16 }
   0xc   :  { %172 = vmatpush.bf16.msrb.mxu1 %v1270_v8  ;;  %663 = vmatpush.bf16.msrb.mxu0 %v1270_v8  ;;  %v194_v43 = vmul.f32 %v1355_v39, %v129_v16  ;;  %v238_v5 = vmul.f32 0.0, %v1390_v63  ;;  %v240_v7 = vmul.f32 %v1392_v1, %v1245_v0  ;;  %v1404_v9 = vperm.slane %v67_v62, 4 }
   0xd   :  { %273 = vmatpush.bf16.msrb.mxu3 %v1270_v8  ;;  %229 = vmatpush.bf16.msra.mxu2 %v1328_v23  ;;  %v185_v32 = vadd.f32 %v184_v28, %v182_v29  ;;  %v190_v36 = vadd.f32 %v189_v34, %v187_v33  ;;  %v1406_v10 = vperm.slane %v67_v62, 2 }
   0xe   :  { %v241_v13 = vadd.f32 %v240_v7, %v238_v5  ;;  %v245_v14 = vmul.f32 %v1404_v9, %v1245_v0 }
   0xf   :  { %v191_v37 = vadd.f32 0.01, %v185_v32  ;;  %v282_v51 = vmul.f32 %v185_v32, %v1338_v26  ;;  %v285_v56 = vmul.f32 %v190_v36, %v1345_v30 }
  0x10   :  { %173 = vmatpush.bf16.msrb.mxu1 %v1283_v11  ;;  %664 = vmatpush.bf16.msrb.mxu0 %v1283_v11 }
  0x11   :  { %274 = vmatpush.bf16.msrb.mxu3 %v1283_v11  ;;  %312 = vmatpush.bf16.msrb.mxu2 %v1321_v22  ;;  %v192_v42 = vadd.f32 %v191_v37, %v190_v36 }
  0x13   :  { %v196_v46 = vmul.f32 %v192_v42, %v129_v16 }
  0x14   :  { %174 = vmatpush.bf16.msrb.mxu1 %v1291_v12  ;;  %665 = vmatpush.bf16.msrb.mxu0 %v1291_v12 }
  0x15   :  { %275 = vmatpush.bf16.msrb.mxu3 %v1291_v12  ;;  %313 = vmatpush.bf16.msrb.mxu2 %v1328_v23 }
  0x17   :  { %1062 = vmatmul.msk.bf16.gmra.mxu1 %vm83_vm1, %v79_v15  ;;  %v243_v15 = vmul.f32 0.018, %v1406_v10 }
  0x18   :  { %350 = vmatpush.bf16.msra.mxu1 %v1261_v6 }
  0x19   :  { %390 = vmatpush.bf16.msra.mxu3 %v1321_v22 }
  0x1c   :  { %351 = vmatpush.bf16.msra.mxu1 %v1270_v8 }
  0x1d   :  { %391 = vmatpush.bf16.msra.mxu3 %v1328_v23 }
  0x20   :  { %352 = vmatpush.bf16.msra.mxu1 %v1283_v11 }
  0x24   :  { %353 = vmatpush.bf16.msra.mxu1 %v1291_v12 }
  0x74   :  { %v134_v17 = vpop.permute.xlu0 %133 }
  0x75   :  { %v137_v18 = vsel %vm136_vm2, %v129_v16, %v134_v17  ;;  %v246_v16 = vadd.f32 %v245_v14, %v243_v15  ;;  %v247_v17 = vadd.f32 0.01, %v241_v13 }
  0x76   :  { %v138_v19 = vpack.c.bf16 %v137_v18, %v137_v18  ;;  %v1413_v18 = vperm.slane %v67_v62, 0 }
  0x77   :  { %v248_v24 = vadd.f32 %v247_v17, %v246_v16 }
  0x78   :  { %1080 = vmatmul.msk.bf16.vlgmr.msrb.gmra.mxu1 %vm163_vm3, %v138_v19  ;;  %v1415_v19 = vperm.slane %v67_v62, 5  ;;  %v250_v33 = vmul.f32 %v1413_v18, %v1245_v0 }
  0x79   :  { %468 = vmatpush.bf16.msrb.mxu1 %v1321_v22  ;;  %v252_v36 = vmul.f32 %v248_v24, %v1245_v0 }
  0x7d   :  { %469 = vmatpush.bf16.msrb.mxu1 %v1328_v23 }
  0x84   :  { %v1314_v20 = vpop.f32.mrf.mxu1  ;;  %v109_v40 = vpop.f32.mrf.mxu0 }
  0x85   :  { %v110_v41 = vadd.f32 %v109_v40, %v1353_v38 }
  0x8c   :  { %v1316_v21 = vpop.f32.mrf.mxu1  ;;  %v111_v2 = vpop.f32.mrf.mxu0 }
  0x8d   :  { %v112_v3 = vadd.f32 %v111_v2, %v1353_v38 }
  0x94   :  { %v1340_v27 = vpop.f32.mrf.mxu1 }
  0x9c   :  { %v1351_v35 = vpop.f32.mrf.mxu1 }
  0xf5   :  { %v176_v44 = vpop.f32.mrf.mxu1 }
  0xf6   :  { %v180_v45 = vadd.f32 %v176_v44, %v110_v41  ;;  %216 = vrot.lane.b32.xlu0 %v176_v44, %s1170_s3  ;;  %v323_v44 = vmul.f32 %v246_v16, %v1406_v10 }
  0xf8   :  { %v195_v47 = vadd.f32 %v194_v43, %v180_v45  ;;  %v320_v43 = vmul.f32 %v241_v13, %v1390_v63 }
  0xfa   :  { %v1360_v48 = vsub.f32 %v195_v47, %v196_v46 }
  0xfc   :  { %v198_v49 = vsub.f32 %v1360_v48, %v192_v42  ;;  %v290_v7 = vmul.f32 %v1360_v48, %v1355_v39 }
  0xfd   :  { %v178_v50 = vpop.f32.mrf.mxu1 }
  0xfe   :  { %vm199_vm4 = vcmp.gt.f32.partialorder %v198_v49, 0.0 }
  0xff   :  { %v1365_v53 = vsel %vm199_vm4, 1.0, %v1171_v52 }
 0x100   :  { %v283_v54 = vmul.f32 %v1365_v53, %v1336_v25  ;;  %v202_v55 = vpack.c.bf16 %v1365_v53, %v1365_v53  ;;  %v286_v57 = vmul.f32 %v1365_v53, %v1347_v31 }
 0x102   :  { %1090 = vmatmul.msk.bf16.vlgmr.msra.gmra.mxu2 %vm136_vm2, %v202_v55  ;;  %v1375_v58 = vadd.f32 %v283_v54, %v282_v51  ;;  %v1378_v59 = vadd.f32 %v286_v57, %v285_v56 }
 0x103   :  { %428 = vmatpush.bf16.msra.mxu2 %v1261_v6 }
 0x104   :  { %v288_v60 = vadd.f32 0.01, %v1375_v58 }
 0x106   :  { %v1382_v61 = vadd.f32 %v288_v60, %v1378_v59  ;;  %v1435_v60 = vpop.f32.mrf.mxu3 }
 0x107   :  { %429 = vmatpush.bf16.msra.mxu2 %v1270_v8 }
 0x108   :  { %v292_v14 = vmul.f32 %v1365_v53, %v1382_v61 }
 0x10b   :  { %430 = vmatpush.bf16.msra.mxu2 %v1283_v11 }
 0x10e   :  { %v1437_v62 = vpop.f32.mrf.mxu3 }
 0x10f   :  { %431 = vmatpush.bf16.msra.mxu2 %v1291_v12 }
 0x168   :  { %v217_v28 = vpop.permute.xlu0 %216 }
 0x185   :  { %v231_v29 = vpop.f32.mrf.mxu2 }
 0x186   :  { %v232_v32 = vadd.f32 %v231_v29, %v217_v28 }
 0x188   :  { %v236_v34 = vadd.f32 %v1415_v19, %v232_v32  ;;  %v360_v32 = vmul.f32 %v1375_v58, %v1338_v26 }
 0x18a   :  { %v251_v37 = vadd.f32 %v250_v33, %v236_v34 }
 0x18c   :  { %v253_v40 = vsub.f32 %v251_v37, %v252_v36 }
 0x18d   :  { %v233_v41 = vpop.f32.mrf.mxu2 }
 0x18e   :  { %v254_v42 = vsub.f32 %v253_v40, %v248_v24 }
 0x190   :  { %vm255_vm5 = vcmp.gt.f32.partialorder %v254_v42, 0.0 }
 0x191   :  { %v1091_v45 = vsel %vm255_vm5, 1.0, %v1171_v52 }
 0x192   :  { %259 = vrot.lane.b32.xlu1 %v1091_v45, %s1169_s29  ;;  %263 = vst.msk [vmem:[#allocation2] sm:$0xff] %vm136_vm2, %v1091_v45  ;;  %v321_v46 = vmul.f32 %v1091_v45, %v1392_v1  ;;  %v324_v47 = vmul.f32 %v1091_v45, %v1404_v9 }
 0x194   :  { %v322_v0 = vadd.f32 %v321_v46, %v320_v43  ;;  %v325_v49 = vadd.f32 %v324_v47, %v323_v44  ;;  %v328_v43 = vmul.f32 %v253_v40, %v1413_v18 }
 0x196   :  { %v326_v50 = vadd.f32 0.01, %v322_v0 }
 0x198   :  { %v327_v51 = vadd.f32 %v326_v50, %v325_v49  ;;  %v398_v50 = vmul.f32 %v322_v0, %v1390_v63  ;;  %v115_v0 = vadd.f32 %v1314_v20, %v1353_v38 }
 0x19a   :  { %v330_v54 = vmul.f32 %v1091_v45, %v327_v51 }
 0x204   :  { %v260_v55 = vpop.permute.xlu1 %259 }
 0x205   :  { %v262_v56 = vsel %vm136_vm2, %v1365_v53, %v260_v55  ;;  %v363_v53 = vmul.f32 %v1378_v59, %v1345_v30 }
 0x206   :  { %v264_v57 = vpack.c.bf16 %v262_v56, %v262_v56 }
 0x208   :  { %1092 = vmatmul.msk.bf16.vlgmr.msrb.gmra.mxu3 %vm163_vm3, %v264_v57  ;;  %v401_v57 = vmul.f32 %v325_v49, %v1406_v10 }
 0x209   :  { %506 = vmatpush.bf16.msrb.mxu3 %v1261_v6 }
 0x20d   :  { %507 = vmatpush.bf16.msrb.mxu3 %v1270_v8 }
 0x211   :  { %508 = vmatpush.bf16.msrb.mxu3 %v1283_v11 }
 0x215   :  { %509 = vmatpush.bf16.msrb.mxu3 %v1291_v12 }
 0x28b   :  { %v277_v4 = vpop.f32.mrf.mxu3 }
 0x28c   :  { %v281_v5 = vadd.f32 %v277_v4, %v112_v3  ;;  %300 = vrot.lane.b32.xlu1 %v277_v4, %s1170_s3 }
 0x28e   :  { %v291_v13 = vadd.f32 %v290_v7, %v281_v5 }
 0x290   :  { %v293_v15 = vsub.f32 %v291_v13, %v292_v14 }
 0x292   :  { %v294_v16 = vsub.f32 %v293_v15, %v1382_v61  ;;  %v368_v14 = vmul.f32 %v293_v15, %v1355_v39 }
 0x293   :  { %v279_v17 = vpop.f32.mrf.mxu3 }
 0x294   :  { %vm295_vm6 = vcmp.gt.f32.partialorder %v294_v16, 0.0 }
 0x295   :  { %v1093_v24 = vsel %vm295_vm6, 1.0, %v1171_v52 }
 0x296   :  { %v361_v28 = vmul.f32 %v1093_v24, %v1336_v25  ;;  %v298_v29 = vpack.c.bf16 %v1093_v24, %v1093_v24  ;;  %v364_v48 = vmul.f32 %v1093_v24, %v1347_v31 }
 0x298   :  { %1094 = vmatmul.msk.bf16.vlgmr.msrb.gmra.mxu2 %vm136_vm2, %v298_v29  ;;  %v362_v33 = vadd.f32 %v361_v28, %v360_v32  ;;  %v365_v61 = vadd.f32 %v364_v48, %v363_v53 }
 0x299   :  { %546 = vmatpush.bf16.msrb.mxu2 %v1321_v22 }
 0x29a   :  { %v366_v34 = vadd.f32 0.01, %v362_v33 }
 0x29c   :  { %v367_v36 = vadd.f32 %v366_v34, %v365_v61 }
 0x29d   :  { %547 = vmatpush.bf16.msrb.mxu2 %v1328_v23 }
 0x29e   :  { %v370_v17 = vmul.f32 %v1093_v24, %v367_v36 }
 0x2fe   :  { %v301_v37 = vpop.permute.xlu1 %300 }
 0x31b   :  { %v315_v41 = vpop.f32.mrf.mxu2 }
 0x31c   :  { %v316_v42 = vadd.f32 %v315_v41, %v301_v37  ;;  %v438_v37 = vmul.f32 %v362_v33, %v1338_v26  ;;  %v441_v41 = vmul.f32 %v365_v61, %v1345_v30 }
 0x31e   :  { %v319_v58 = vadd.f32 %v316_v42, %v1415_v19 }
 0x320   :  { %v329_v44 = vadd.f32 %v328_v43, %v319_v58 }
 0x322   :  { %v331_v45 = vsub.f32 %v329_v44, %v330_v54 }
 0x323   :  { %v317_v46 = vpop.f32.mrf.mxu2 }
 0x324   :  { %v332_v47 = vsub.f32 %v331_v45, %v327_v51  ;;  %v406_v33 = vmul.f32 %v331_v45, %v1413_v18 }
 0x326   :  { %vm333_vm7 = vcmp.gt.f32.partialorder %v332_v47, 0.0 }
 0x327   :  { %v1095_v59 = vsel %vm333_vm7, 1.0, %v1171_v52 }
 0x328   :  { %337 = vrot.lane.b32.xlu2 %v1095_v59, %s1169_s29  ;;  %341 = vst.msk [vmem:[#allocation2 + $0x8] sm:$0xff] %vm136_vm2, %v1095_v59  ;;  %v399_v55 = vmul.f32 %v1095_v59, %v1392_v1  ;;  %v402_v56 = vmul.f32 %v1095_v59, %v1404_v9 }
 0x32a   :  { %v400_v40 = vadd.f32 %v399_v55, %v398_v50  ;;  %v403_v2 = vadd.f32 %v402_v56, %v401_v57 }
 0x32c   :  { %v404_v54 = vadd.f32 0.01, %v400_v40  ;;  %v476_v56 = vmul.f32 %v400_v40, %v1390_v63  ;;  %v117_v40 = vadd.f32 %v1316_v21, %v1353_v38 }
 0x32e   :  { %v405_v3 = vadd.f32 %v404_v54, %v403_v2 }
 0x330   :  { %v408_v51 = vmul.f32 %v1095_v59, %v405_v3 }
 0x382   :  { %v338_v4 = vpop.permute.xlu2 %337 }
 0x383   :  { %v340_v5 = vsel %vm136_vm2, %v1093_v24, %v338_v4  ;;  %v479_v4 = vmul.f32 %v403_v2, %v1406_v10 }
 0x384   :  { %v342_v7 = vpack.c.bf16 %v340_v5, %v340_v5 }
 0x386   :  { %1096 = vmatmul.msk.bf16.vlgmr.msra.gmra.mxu1 %vm163_vm3, %v342_v7 }
 0x387   :  { %584 = vmatpush.bf16.msra.mxu1 %v1261_v6 }
 0x38b   :  { %585 = vmatpush.bf16.msra.mxu1 %v1270_v8 }
 0x38f   :  { %586 = vmatpush.bf16.msra.mxu1 %v1283_v11 }
 0x393   :  { %587 = vmatpush.bf16.msra.mxu1 %v1291_v12 }
 0x403   :  { %v355_v49 = vpop.f32.mrf.mxu1 }
 0x404   :  { %v359_v13 = vadd.f32 %v355_v49, %v115_v0  ;;  %378 = vrot.lane.b32.xlu2 %v355_v49, %s1170_s3 }
 0x406   :  { %v369_v16 = vadd.f32 %v368_v14, %v359_v13 }
 0x408   :  { %v371_v28 = vsub.f32 %v369_v16, %v370_v17 }
 0x40a   :  { %v372_v29 = vsub.f32 %v371_v28, %v367_v36  ;;  %v446_v16 = vmul.f32 %v371_v28, %v1355_v39 }
 0x40b   :  { %v357_v32 = vpop.f32.mrf.mxu1 }
 0x40c   :  { %vm373_vm8 = vcmp.gt.f32.partialorder %v372_v29, 0.0 }
 0x40d   :  { %v1097_v48 = vsel %vm373_vm8, 1.0, %v1171_v52 }
 0x40e   :  { %v439_v53 = vmul.f32 %v1097_v48, %v1336_v25  ;;  %v376_v34 = vpack.c.bf16 %v1097_v48, %v1097_v48  ;;  %v442_v20 = vmul.f32 %v1097_v48, %v1347_v31 }
 0x410   :  { %1098 = vmatmul.msk.bf16.vlgmr.msra.gmra.mxu3 %vm136_vm2, %v376_v34  ;;  %v440_v15 = vadd.f32 %v439_v53, %v438_v37  ;;  %v443_v24 = vadd.f32 %v442_v20, %v441_v41 }
 0x411   :  { %624 = vmatpush.bf16.msra.mxu3 %v1321_v22 }
 0x412   :  { %v444_v36 = vadd.f32 0.01, %v440_v15 }
 0x414   :  { %v445_v42 = vadd.f32 %v444_v36, %v443_v24  ;;  %v516_v36 = vmul.f32 %v440_v15, %v1338_v26 }
 0x415   :  { %625 = vmatpush.bf16.msra.mxu3 %v1328_v23 }
 0x416   :  { %v448_v29 = vmul.f32 %v1097_v48, %v445_v42 }
 0x45e   :  { %v379_v58 = vpop.permute.xlu2 %378 }
 0x493   :  { %v393_v43 = vpop.f32.mrf.mxu3 }
 0x494   :  { %v394_v44 = vadd.f32 %v393_v43, %v379_v58  ;;  %v519_v58 = vmul.f32 %v443_v24, %v1345_v30 }
 0x496   :  { %v397_v46 = vadd.f32 %v394_v44, %v1415_v19 }
 0x498   :  { %v407_v47 = vadd.f32 %v406_v33, %v397_v46 }
 0x49a   :  { %v409_v59 = vsub.f32 %v407_v47, %v408_v51 }
 0x49b   :  { %v395_v50 = vpop.f32.mrf.mxu3 }
 0x49c   :  { %v410_v55 = vsub.f32 %v409_v59, %v405_v3  ;;  %v484_v47 = vmul.f32 %v409_v59, %v1413_v18 }
 0x49e   :  { %vm411_vm9 = vcmp.gt.f32.partialorder %v410_v55, 0.0 }
 0x49f   :  { %v1099_v61 = vsel %vm411_vm9, 1.0, %v1171_v52 }
 0x4a0   :  { %415 = vrot.lane.b32.xlu0 %v1099_v61, %s1169_s29  ;;  %419 = vst.msk [vmem:[#allocation2 + $0x10] sm:$0xff] %vm136_vm2, %v1099_v61  ;;  %v477_v57 = vmul.f32 %v1099_v61, %v1392_v1  ;;  %v480_v54 = vmul.f32 %v1099_v61, %v1404_v9 }
 0x4a2   :  { %v478_v45 = vadd.f32 %v477_v57, %v476_v56  ;;  %v481_v5 = vadd.f32 %v480_v54, %v479_v4 }
 0x4a4   :  { %v482_v51 = vadd.f32 0.01, %v478_v45  ;;  %v557_v56 = vmul.f32 %v481_v5, %v1406_v10 }
 0x4a6   :  { %v483_v7 = vadd.f32 %v482_v51, %v481_v5 }
 0x4a8   :  { %v486_v3 = vmul.f32 %v1099_v61, %v483_v7 }
 0x512   :  { %v416_v0 = vpop.permute.xlu0 %415 }
 0x513   :  { %v418_v49 = vsel %vm136_vm2, %v1097_v48, %v416_v0 }
 0x514   :  { %v420_v13 = vpack.c.bf16 %v418_v49, %v418_v49 }
 0x516   :  { %1100 = vmatmul.msk.bf16.vlgmr.msra.gmra.mxu2 %vm163_vm3, %v420_v13 }
 0x517   :  { %702 = vmatpush.bf16.msra.mxu2 %v1321_v22 }
 0x51b   :  { %703 = vmatpush.bf16.msra.mxu2 %v1328_v23 }
 0x599   :  { %v433_v14 = vpop.f32.mrf.mxu2 }
 0x59a   :  { %v437_v2 = vadd.f32 %v433_v14, %v117_v40  ;;  %456 = vrot.lane.b32.xlu1 %v433_v14, %s1170_s3 }
 0x59c   :  { %v447_v17 = vadd.f32 %v446_v16, %v437_v2 }
 0x59e   :  { %v449_v32 = vsub.f32 %v447_v17, %v448_v29 }
 0x5a0   :  { %v450_v53 = vsub.f32 %v449_v32, %v445_v42  ;;  %v524_v13 = vmul.f32 %v449_v32, %v1355_v39 }
 0x5a1   :  { %v435_v34 = vpop.f32.mrf.mxu2 }
 0x5a2   :  { %vm451_vm10 = vcmp.gt.f32.partialorder %v450_v53, 0.0 }
 0x5a3   :  { %v1101_v37 = vsel %vm451_vm10, 1.0, %v1171_v52 }
 0x5a4   :  { %v517_v20 = vmul.f32 %v1101_v37, %v1336_v25  ;;  %v454_v41 = vpack.c.bf16 %v1101_v37, %v1101_v37  ;;  %v520_v21 = vmul.f32 %v1101_v37, %v1347_v31 }
 0x5a6   :  { %1102 = vmatmul.msk.bf16.vlgmr.msrb.gmra.mxu1 %vm136_vm2, %v454_v41  ;;  %v518_v28 = vadd.f32 %v517_v20, %v516_v36  ;;  %v521_v48 = vadd.f32 %v520_v21, %v519_v58 }
 0x5a7   :  { %740 = vmatpush.bf16.msrb.mxu1 %v1261_v6 }
 0x5a8   :  { %v522_v42 = vadd.f32 0.01, %v518_v28  ;;  %v594_v53 = vmul.f32 %v518_v28, %v1338_v26  ;;  %v597_v34 = vmul.f32 %v521_v48, %v1345_v30 }
 0x5aa   :  { %v523_v43 = vadd.f32 %v522_v42, %v521_v48 }
 0x5ab   :  { %741 = vmatpush.bf16.msrb.mxu1 %v1270_v8  ;;  %v554_v8 = vmul.f32 %v478_v45, %v1390_v63  ;;  %v120_v45 = vadd.f32 %v1340_v27, %v1353_v38 }
 0x5ac   :  { %v526_v14 = vmul.f32 %v1101_v37, %v523_v43 }
 0x5af   :  { %742 = vmatpush.bf16.msrb.mxu1 %v1283_v11 }
 0x5b3   :  { %743 = vmatpush.bf16.msrb.mxu1 %v1291_v12 }
 0x60c   :  { %v457_v44 = vpop.permute.xlu1 %456 }
 0x623   :  { %v471_v15 = vpop.f32.mrf.mxu1 }
 0x624   :  { %v472_v46 = vadd.f32 %v471_v15, %v457_v44 }
 0x626   :  { %v475_v33 = vadd.f32 %v472_v46, %v1415_v19 }
 0x628   :  { %v485_v50 = vadd.f32 %v484_v47, %v475_v33 }
 0x62a   :  { %v487_v24 = vsub.f32 %v485_v50, %v486_v3 }
 0x62b   :  { %v473_v55 = vpop.f32.mrf.mxu1 }
 0x62c   :  { %v488_v6 = vsub.f32 %v487_v24, %v483_v7 }
 0x62e   :  { %vm489_vm11 = vcmp.gt.f32.partialorder %v488_v6, 0.0 }
 0x62f   :  { %v1103_v61 = vsel %vm489_vm11, 1.0, %v1171_v52 }
 0x630   :  { %493 = vrot.lane.b32.xlu2 %v1103_v61, %s1169_s29  ;;  %497 = vst.msk [vmem:[#allocation2 + $0x18] sm:$0xff] %vm136_vm2, %v1103_v61  ;;  %v555_v11 = vmul.f32 %v1103_v61, %v1392_v1  ;;  %v558_v12 = vmul.f32 %v1103_v61, %v1404_v9 }
 0x632   :  { %v556_v59 = vadd.f32 %v555_v11, %v554_v8  ;;  %v559_v57 = vadd.f32 %v558_v12, %v557_v56 }
 0x634   :  { %v560_v54 = vadd.f32 0.01, %v556_v59  ;;  %v632_v47 = vmul.f32 %v556_v59, %v1390_v63  ;;  %v635_v55 = vmul.f32 %v559_v57, %v1406_v10  ;;  %v122_v59 = vadd.f32 %v1351_v35, %v1353_v38 }
 0x636   :  { %v561_v4 = vadd.f32 %v560_v54, %v559_v57 }
 0x638   :  { %v564_v51 = vmul.f32 %v1103_v61, %v561_v4 }
 0x68a   :  { %v494_v7 = vpop.permute.xlu2 %493 }
 0x68b   :  { %v496_v3 = vsel %vm136_vm2, %v1101_v37, %v494_v7 }
 0x68c   :  { %v498_v0 = vpack.c.bf16 %v496_v3, %v496_v3 }
 0x68e   :  { %1104 = vmatmul.msk.bf16.vlgmr.msrb.gmra.mxu3 %vm163_vm3, %v498_v0 }
 0x68f   :  { %780 = vmatpush.bf16.msrb.mxu3 %v1321_v22 }
 0x693   :  { %781 = vmatpush.bf16.msrb.mxu3 %v1328_v23 }
 0x711   :  { %v511_v49 = vpop.f32.mrf.mxu3 }
 0x712   :  { %v515_v5 = vadd.f32 %v511_v49, %v120_v45  ;;  %534 = vrot.lane.b32.xlu0 %v511_v49, %s1170_s3 }
 0x714   :  { %v525_v40 = vadd.f32 %v524_v13, %v515_v5 }
 0x716   :  { %v527_v2 = vsub.f32 %v525_v40, %v526_v14 }
 0x718   :  { %v528_v16 = vsub.f32 %v527_v2, %v523_v43  ;;  %v562_v43 = vmul.f32 %v487_v24, %v1413_v18  ;;  %v602_v7 = vmul.f32 %v527_v2, %v1355_v39 }
 0x719   :  { %v513_v17 = vpop.f32.mrf.mxu3 }
 0x71a   :  { %vm529_vm12 = vcmp.gt.f32.partialorder %v528_v16, 0.0 }
 0x71b   :  { %v1105_v29 = vsel %vm529_vm12, 1.0, %v1171_v52 }
 0x71c   :  { %v595_v22 = vmul.f32 %v1105_v29, %v1336_v25  ;;  %v532_v23 = vpack.c.bf16 %v1105_v29, %v1105_v29  ;;  %v598_v27 = vmul.f32 %v1105_v29, %v1347_v31 }
 0x71e   :  { %1106 = vmatmul.msk.bf16.vlgmr.msrb.gmra.mxu2 %vm136_vm2, %v532_v23  ;;  %v596_v32 = vadd.f32 %v595_v22, %v594_v53  ;;  %v599_v20 = vadd.f32 %v598_v27, %v597_v34 }
 0x720   :  { %v600_v37 = vadd.f32 0.01, %v596_v32  ;;  %v672_v14 = vmul.f32 %v596_v32, %v1338_v26  ;;  %v675_v16 = vmul.f32 %v599_v20, %v1345_v30 }
 0x722   :  { %v601_v41 = vadd.f32 %v600_v37, %v599_v20 }
 0x724   :  { %v604_v3 = vmul.f32 %v1105_v29, %v601_v41 }
 0x784   :  { %v535_v36 = vpop.permute.xlu0 %534 }
 0x7a1   :  { %v549_v21 = vpop.f32.mrf.mxu2 }
 0x7a2   :  { %v550_v58 = vadd.f32 %v549_v21, %v535_v36 }
 0x7a4   :  { %v553_v42 = vadd.f32 %v550_v58, %v1415_v19 }
 0x7a6   :  { %v563_v44 = vadd.f32 %v562_v43, %v553_v42 }
 0x7a8   :  { %v565_v15 = vsub.f32 %v563_v44, %v564_v51 }
 0x7a9   :  { %v551_v28 = vpop.f32.mrf.mxu2 }
 0x7aa   :  { %v566_v46 = vsub.f32 %v565_v15, %v561_v4  ;;  %v640_v37 = vmul.f32 %v565_v15, %v1413_v18 }
 0x7ac   :  { %vm567_vm13 = vcmp.gt.f32.partialorder %v566_v46, 0.0 }
 0x7ad   :  { %v1107_v33 = vsel %vm567_vm13, 1.0, %v1171_v52 }
 0x7ae   :  { %571 = vrot.lane.b32.xlu1 %v1107_v33, %s1169_s29  ;;  %575 = vst.msk [vmem:[#allocation2 + $0x20] sm:$0xff] %vm136_vm2, %v1107_v33  ;;  %v633_v48 = vmul.f32 %v1107_v33, %v1392_v1  ;;  %v636_v50 = vmul.f32 %v1107_v33, %v1404_v9 }
 0x7b0   :  { %v634_v24 = vadd.f32 %v633_v48, %v632_v47  ;;  %v637_v6 = vadd.f32 %v636_v50, %v635_v55  ;;  %v1156_v48 = vld [vmem:[%s1724_s4 + $0x8] sm:$0xff]  ;;  %v1155_v50 = vld [vmem:[%s1724_s4] sm:$0xff] }
 0x7b1   :  { %848 = vmatpush.bf16.msra.mxu0 %v1156_v48 }
 0x7b2   :  { %v638_v61 = vadd.f32 0.01, %v634_v24  ;;  %v710_v58 = vmul.f32 %v634_v24, %v1390_v63  ;;  %v713_v44 = vmul.f32 %v637_v6, %v1406_v10 }
 0x7b4   :  { %v639_v8 = vadd.f32 %v638_v61, %v637_v6  ;;  %v806_v61 = vld [vmem:[#allocation2 + $0x8] sm:$0xff] }
 0x7b5   :  { %849 = vmatpush.bf16.msra.mxu0 %v1155_v50 }
 0x7b6   :  { %v642_v11 = vmul.f32 %v1107_v33, %v639_v8 }
 0x820   :  { %v572_v12 = vpop.permute.xlu1 %571 }
 0x821   :  { %v574_v56 = vsel %vm136_vm2, %v1105_v29, %v572_v12  ;;  %v808_v12 = vld [vmem:[#allocation2 + $0x18] sm:$0xff] }
 0x822   :  { %v576_v54 = vpack.c.bf16 %v574_v56, %v574_v56  ;;  %v807_v56 = vld [vmem:[#allocation2 + $0x10] sm:$0xff] }
 0x824   :  { %1108 = vmatmul.msk.bf16.vlgmr.msra.gmra.mxu1 %vm163_vm3, %v576_v54  ;;  %v814_v54 = vpack.c.bf16 %v808_v12, %v807_v56  ;;  %v131_v12 = vld [vmem:[%s1726_s12] sm:$0xff] }
 0x8a1   :  { %v589_v4 = vpop.f32.mrf.mxu1 }
 0x8a2   :  { %v593_v51 = vadd.f32 %v589_v4, %v122_v59  ;;  %612 = vrot.lane.b32.xlu2 %v589_v4, %s1170_s3  ;;  %v809_v4 = vld [vmem:[#allocation2 + $0x20] sm:$0xff] }
 0x8a4   :  { %v603_v57 = vadd.f32 %v602_v7, %v593_v51  ;;  %v125_v7 = vadd.f32 %v1435_v60, %v1353_v38 }
 0x8a6   :  { %v605_v0 = vsub.f32 %v603_v57, %v604_v3 }
 0x8a8   :  { %v606_v45 = vsub.f32 %v605_v0, %v601_v41 }
 0x8a9   :  { %v591_v49 = vpop.f32.mrf.mxu1 }
 0x8aa   :  { %vm607_vm14 = vcmp.gt.f32.partialorder %v606_v45, 0.0  ;;  %v680_v45 = vmul.f32 %v605_v0, %v1355_v39 }
 0x8ab   :  { %v1109_v5 = vsel %vm607_vm14, 1.0, %v1171_v52 }
 0x8ac   :  { %v673_v13 = vmul.f32 %v1109_v5, %v1336_v25  ;;  %v610_v40 = vpack.c.bf16 %v1109_v5, %v1109_v5  ;;  %v676_v35 = vmul.f32 %v1109_v5, %v1347_v31 }
 0x8ae   :  { %1110 = vmatmul.msk.bf16.vlgmr.msra.gmra.mxu3 %vm136_vm2, %v610_v40  ;;  %v674_v2 = vadd.f32 %v673_v13, %v672_v14  ;;  %v1554_v17 = vadd.f32 %v676_v35, %v675_v16 }
 0x8b0   :  { %v678_v29 = vadd.f32 0.01, %v674_v2 }
 0x8b2   :  { %v679_v22 = vadd.f32 %v678_v29, %v1554_v17 }
 0x8b4   :  { %v682_v13 = vmul.f32 %v1109_v5, %v679_v22 }
 0x8fc   :  { %v613_v23 = vpop.permute.xlu2 %612 }
 0x931   :  { %v627_v53 = vpop.f32.mrf.mxu3 }
 0x932   :  { %v628_v27 = vadd.f32 %v627_v53, %v613_v23  ;;  %v750_v23 = vmul.f32 %v674_v2, %v1338_v26 }
 0x934   :  { %v631_v34 = vadd.f32 %v628_v27, %v1415_v19  ;;  %v753_v27 = vmul.f32 %v1554_v17, %v1345_v30 }
 0x936   :  { %v641_v32 = vadd.f32 %v640_v37, %v631_v34 }
 0x938   :  { %v1559_v41 = vsub.f32 %v641_v32, %v642_v11 }
 0x939   :  { %v629_v36 = vpop.f32.mrf.mxu3 }
 0x93a   :  { %v644_v21 = vsub.f32 %v1559_v41, %v639_v8  ;;  %v805_v8 = vld [vmem:[#allocation2] sm:$0xff]  ;;  %v718_v26 = vmul.f32 %v1559_v41, %v1413_v18 }
 0x93b   :  { %v813_v11 = vpack.c.bf16 %v806_v61, %v805_v8 }
 0x93c   :  { %vm645_vm15 = vcmp.gt.f32.partialorder %v644_v21, 0.0 }
 0x93d   :  { %v1111_v20 = vsel %vm645_vm15, 1.0, %v1171_v52 }
 0x93e   :  { %649 = vrot.lane.b32.xlu0 %v1111_v20, %s1169_s29  ;;  %653 = vst.msk [vmem:[#allocation2 + $0x28] sm:$0xff] %vm136_vm2, %v1111_v20  ;;  %v711_v42 = vmul.f32 %v1111_v20, %v1392_v1  ;;  %v714_v43 = vmul.f32 %v1111_v20, %v1404_v9 }
 0x940   :  { %v712_v15 = vadd.f32 %v711_v42, %v710_v58  ;;  %v1569_v28 = vadd.f32 %v714_v43, %v713_v44 }
 0x942   :  { %v716_v46 = vadd.f32 0.01, %v712_v15  ;;  %v788_v17 = vmul.f32 %v712_v15, %v1390_v63  ;;  %v791_v41 = vmul.f32 %v1569_v28, %v1406_v10 }
 0x944   :  { %v717_v33 = vadd.f32 %v716_v46, %v1569_v28 }
 0x945   :  { %v810_v59 = vld [vmem:[#allocation2 + $0x28] sm:$0xff] }
 0x946   :  { %v720_v47 = vmul.f32 %v1111_v20, %v717_v33  ;;  %v815_v51 = vpack.c.bf16 %v810_v59, %v809_v4 }
 0x9b0   :  { %v650_v55 = vpop.permute.xlu0 %649 }
 0x9b1   :  { %v652_v24 = vsel %vm136_vm2, %v1109_v5, %v650_v55 }
 0x9b2   :  { %v654_v6 = vpack.c.bf16 %v652_v24, %v652_v24 }
 0x9b4   :  { %1112 = vmatmul.msk.bf16.vlgmr.msrb.gmra.mxu0 %vm163_vm3, %v654_v6 }
 0x9c4   :  { %1128 = vmatmul.msk.bf16.vlgmr.msra.gmra.mxu0 %vm136_vm2, %v813_v11 }
 0x9d4   :  { %1129 = vmatmul.msk.bf16.gmra.mxu0 %vm136_vm2, %v814_v54 }
 0x9e4   :  { %1130 = vmatmul.msk.bf16.gmra.mxu0 %vm136_vm2, %v815_v51 }
 0xa31   :  { %v667_v57 = vpop.f32.mrf.mxu0 }
 0xa32   :  { %v671_v3 = vadd.f32 %v667_v57, %v125_v7  ;;  %690 = vrot.lane.b32.xlu1 %v667_v57, %s1170_s3 }
 0xa34   :  { %v681_v49 = vadd.f32 %v680_v45, %v671_v3 }
 0xa36   :  { %v683_v40 = vsub.f32 %v681_v49, %v682_v13 }
 0xa38   :  { %v684_v14 = vsub.f32 %v683_v40, %v679_v22  ;;  %v758_v10 = vmul.f32 %v683_v40, %v1355_v39 }
 0xa39   :  { %v669_v35 = vpop.f32.mrf.mxu0 }
 0xa3a   :  { %vm685_vm0 = vcmp.gt.f32.partialorder %v684_v14, 0.0 }
 0xa3b   :  { %v1113_v16 = vsel %vm685_vm0, 1.0, %v1171_v52 }
 0xa3c   :  { %v688_v29 = vpack.c.bf16 %v1113_v16, %v1113_v16  ;;  %v751_v53 = vmul.f32 %v1113_v16, %v1336_v25  ;;  %v754_v60 = vmul.f32 %v1113_v16, %v1347_v31 }
 0xa3e   :  { %1114 = vmatmul.msk.bf16.vlgmr.msra.gmra.mxu2 %vm136_vm2, %v688_v29  ;;  %v752_v0 = vadd.f32 %v751_v53, %v750_v23  ;;  %v755_v5 = vadd.f32 %v754_v60, %v753_v27 }
 0xa40   :  { %v756_v34 = vadd.f32 0.01, %v752_v0 }
 0xa41   :  { %v851_v40 = vpop.f32.mrf.mxu0 }
 0xa42   :  { %v757_v22 = vadd.f32 %v756_v34, %v755_v5 }
 0xa44   :  { %v760_v55 = vmul.f32 %v1113_v16, %v757_v22 }
 0xaa4   :  { %v691_v37 = vpop.permute.xlu1 %690 }
 0xac1   :  { %v705_v32 = vpop.f32.mrf.mxu2 }
 0xac2   :  { %v706_v36 = vadd.f32 %v705_v32, %v691_v37 }
 0xac4   :  { %v709_v21 = vadd.f32 %v706_v36, %v1415_v19 }
 0xac6   :  { %v719_v25 = vadd.f32 %v718_v26, %v709_v21  ;;  %v853_v21 = vpop.f32.mrf.mxu0 }
 0xac8   :  { %v1597_v2 = vsub.f32 %v719_v25, %v720_v47 }
 0xac9   :  { %v707_v31 = vpop.f32.mrf.mxu2 }
 0xaca   :  { %v722_v20 = vsub.f32 %v1597_v2, %v717_v33 }
 0xacc   :  { %vm723_vm1 = vcmp.gt.f32.partialorder %v722_v20, 0.0 }
 0xacd   :  { %v1115_v30 = vsel %vm723_vm1, 1.0, %v1171_v52 }
 0xace   :  { %727 = vrot.lane.b32.xlu2 %v1115_v30, %s1169_s29  ;;  %731 = vst.msk [vmem:[#allocation2 + $0x30] sm:$0xff] %vm136_vm2, %v1115_v30  ;;  %v789_v58 = vmul.f32 %v1115_v30, %v1392_v1  ;;  %v792_v42 = vmul.f32 %v1115_v30, %v1404_v9  ;;  %v127_v1 = vadd.f32 %v1437_v62, %v1353_v38  ;;  %v68_v38 = vld [vmem:[%s1725_s9] sm:$0x3f] }
 0xacf   :  { %v1624_v62 = vperm.slane %v68_v38, 1  ;;  %v1626_v39 = vperm.slane %v68_v38, 3  ;;  %v1633_v59 = vperm.slane %v68_v38, 2  ;;  %v1635_v4 = vperm.slane %v68_v38, 4 }
 0xad0   :  { %v790_v43 = vadd.f32 %v789_v58, %v788_v17  ;;  %v793_v44 = vadd.f32 %v792_v42, %v791_v41  ;;  %v1639_v3 = vperm.slane %v68_v38, 5  ;;  %v1641_v13 = vperm.slane %v68_v38, 0 }
 0xad1   :  { %v872_v56 = vmul.f32 0.0, %v1624_v62  ;;  %v874_v54 = vmul.f32 %v1626_v39, %v131_v12  ;;  %v877_v7 = vmul.f32 0.018, %v1633_v59  ;;  %v879_v57 = vmul.f32 %v1635_v4, %v131_v12 }
 0xad2   :  { %v794_v46 = vadd.f32 0.01, %v790_v43  ;;  %v852_v14 = vadd.f32 %v851_v40, %v1639_v3  ;;  %v854_v25 = vadd.f32 %v853_v21, %v1639_v3 }
 0xad3   :  { %v875_v51 = vadd.f32 %v874_v54, %v872_v56  ;;  %v880_v45 = vadd.f32 %v879_v57, %v877_v7 }
 0xad4   :  { %v1608_v33 = vadd.f32 %v794_v46, %v793_v44 }
 0xad5   :  { %v881_v49 = vadd.f32 0.01, %v875_v51  ;;  %v892_v27 = vmul.f32 %v875_v51, %v1624_v62  ;;  %v895_v37 = vmul.f32 %v880_v45, %v1633_v59  ;;  %v811_v54 = vld [vmem:[#allocation2 + $0x30] sm:$0xff] }
 0xad6   :  { %v1611_v47 = vmul.f32 %v1115_v30, %v1608_v33 }
 0xad7   :  { %v882_v35 = vadd.f32 %v881_v49, %v880_v45 }
 0xad9   :  { %v886_v23 = vmul.f32 %v882_v35, %v131_v12 }
 0xb28   :  { %v728_v63 = vpop.permute.xlu2 %727 }
 0xb29   :  { %v730_v15 = vsel %vm136_vm2, %v1113_v16, %v728_v63  ;;  %v884_v16 = vmul.f32 %v1641_v13, %v131_v12 }
 0xb2a   :  { %v732_v48 = vpack.c.bf16 %v730_v15, %v730_v15 }
 0xb2b   :  { %v885_v29 = vadd.f32 %v884_v16, %v852_v14 }
 0xb2c   :  { %1116 = vmatmul.msk.bf16.vlgmr.msrb.gmra.mxu1 %vm163_vm3, %v732_v48 }
 0xb2d   :  { %v887_v53 = vsub.f32 %v885_v29, %v886_v23 }
 0xb2f   :  { %v888_v60 = vsub.f32 %v887_v53, %v882_v35  ;;  %v900_v31 = vmul.f32 %v887_v53, %v1641_v13 }
 0xb31   :  { %vm889_vm3 = vcmp.gt.f32.partialorder %v888_v60, 0.0  ;;  %v901_v30 = vadd.f32 %v900_v31, %v854_v25 }
 0xb32   :  { %v1132_v0 = vsel %vm889_vm3, 1.0, %v1171_v52 }
 0xb33   :  { %v893_v5 = vmul.f32 %v1132_v0, %v1626_v39 }
 0xb35   :  { %v894_v34 = vadd.f32 %v893_v5, %v892_v27 }
 0xb37   :  { %v898_v32 = vadd.f32 0.01, %v894_v34  ;;  %v908_v46 = vmul.f32 %v894_v34, %v1624_v62 }
 0xba9   :  { %v745_v9 = vpop.f32.mrf.mxu1 }
 0xbaa   :  { %v749_v50 = vadd.f32 %v745_v9, %v127_v1  ;;  %768 = vrot.lane.b32.xlu0 %v745_v9, %s1170_s3  ;;  %v796_v1 = vmul.f32 %v1597_v2, %v1413_v18 }
 0xbac   :  { %v759_v28 = vadd.f32 %v758_v10, %v749_v50 }
 0xbae   :  { %v761_v24 = vsub.f32 %v759_v28, %v760_v55 }
 0xbb0   :  { %v762_v6 = vsub.f32 %v761_v24, %v757_v22  ;;  %v896_v22 = vmul.f32 %v1132_v0, %v1635_v4 }
 0xbb1   :  { %v747_v61 = vpop.f32.mrf.mxu1 }
 0xbb2   :  { %vm763_vm4 = vcmp.gt.f32.partialorder %v762_v6, 0.0  ;;  %v897_v36 = vadd.f32 %v896_v22, %v895_v37 }
 0xbb3   :  { %v1117_v8 = vsel %vm763_vm4, 1.0, %v1171_v52 }
 0xbb4   :  { %v766_v11 = vpack.c.bf16 %v1117_v8, %v1117_v8  ;;  %v899_v26 = vadd.f32 %v898_v32, %v897_v36  ;;  %v911_v10 = vmul.f32 %v897_v36, %v1633_v59 }
 0xbb6   :  { %1118 = vmatmul.msk.bf16.vlgmr.msrb.gmra.mxu3 %vm136_vm2, %v766_v11  ;;  %v902_v20 = vmul.f32 %v1132_v0, %v899_v26  ;;  %v856_v11 = vpop.f32.mrf.mxu0 }
 0xbb7   :  { %v857_v18 = vadd.f32 %v856_v11, %v1639_v3 }
 0xbb8   :  { %v903_v17 = vsub.f32 %v901_v30, %v902_v20 }
 0xbba   :  { %v904_v58 = vsub.f32 %v903_v17, %v899_v26  ;;  %v916_v38 = vmul.f32 %v903_v17, %v1641_v13 }
 0xbbc   :  { %vm905_vm5 = vcmp.gt.f32.partialorder %v904_v58, 0.0  ;;  %v917_v12 = vadd.f32 %v916_v38, %v857_v18 }
 0xbbd   :  { %v1133_v42 = vsel %vm905_vm5, 1.0, %v1171_v52 }
 0xbbe   :  { %v909_v41 = vmul.f32 %v1133_v42, %v1626_v39  ;;  %v912_v9 = vmul.f32 %v1133_v42, %v1635_v4  ;;  %v858_v23 = vpop.f32.mrf.mxu0 }
 0xbbf   :  { %v859_v60 = vadd.f32 %v858_v23, %v1639_v3 }
 0xbc0   :  { %v910_v15 = vadd.f32 %v909_v41, %v908_v46  ;;  %v913_v6 = vadd.f32 %v912_v9, %v911_v10 }
 0xbc2   :  { %v914_v28 = vadd.f32 0.01, %v910_v15  ;;  %v924_v45 = vmul.f32 %v910_v15, %v1624_v62  ;;  %v927_v14 = vmul.f32 %v913_v6, %v1633_v59 }
 0xbc4   :  { %v915_v8 = vadd.f32 %v914_v28, %v913_v6 }
 0xbc6   :  { %v918_v2 = vmul.f32 %v1133_v42, %v915_v8  ;;  %v861_v30 = vpop.f32.mrf.mxu0 }
 0xbc7   :  { %v862_v58 = vadd.f32 %v861_v30, %v1639_v3 }
 0xbc8   :  { %v919_v56 = vsub.f32 %v917_v12, %v918_v2  ;;  %v1158_v2 = vld [vmem:[%s1728_s5 + $0x8] sm:$0xff] }
 0xbc9   :  { %1029 = vmatpush.bf16.msrb.mxu2 %v1158_v2 }
 0xbca   :  { %v920_v7 = vsub.f32 %v919_v56, %v915_v8  ;;  %v932_v53 = vmul.f32 %v919_v56, %v1641_v13 }
 0xbcc   :  { %vm921_vm7 = vcmp.gt.f32.partialorder %v920_v7, 0.0  ;;  %v933_v27 = vadd.f32 %v932_v53, %v859_v60 }
 0xc1c   :  { %v769_v43 = vpop.permute.xlu0 %768 }
 0xc39   :  { %v783_v44 = vpop.f32.mrf.mxu3 }
 0xc3a   :  { %v784_v63 = vadd.f32 %v783_v44, %v769_v43 }
 0xc3c   :  { %v787_v48 = vadd.f32 %v784_v63, %v1415_v19 }
 0xc3e   :  { %v797_v50 = vadd.f32 %v796_v1, %v787_v48 }
 0xc40   :  { %v799_v55 = vsub.f32 %v797_v50, %v1611_v47 }
 0xc41   :  { %v785_v24 = vpop.f32.mrf.mxu3 }
 0xc42   :  { %v800_v61 = vsub.f32 %v799_v55, %v1608_v33  ;;  %v1134_v33 = vsel %vm921_vm7, 1.0, %v1171_v52  ;;  %v863_v55 = vpop.f32.mrf.mxu0 }
 0xc43   :  { %v925_v57 = vmul.f32 %v1134_v33, %v1626_v39  ;;  %v928_v40 = vmul.f32 %v1134_v33, %v1635_v4  ;;  %v864_v6 = vadd.f32 %v863_v55, %v1639_v3 }
 0xc44   :  { %vm801_vm6 = vcmp.gt.f32.partialorder %v800_v61, 0.0 }
 0xc45   :  { %v1119_v19 = vsel %vm801_vm6, 1.0, %v1171_v52  ;;  %v926_v49 = vadd.f32 %v925_v57, %v924_v45  ;;  %v929_v16 = vadd.f32 %v928_v40, %v927_v14 }
 0xc46   :  { %804 = vst.msk [vmem:[#allocation2 + $0x38] sm:$0xff] %vm136_vm2, %v1119_v19 }
 0xc47   :  { %v930_v35 = vadd.f32 0.01, %v926_v49  ;;  %v940_v32 = vmul.f32 %v926_v49, %v1624_v62  ;;  %v943_v26 = vmul.f32 %v929_v16, %v1633_v59 }
 0xc49   :  { %v931_v29 = vadd.f32 %v930_v35, %v929_v16 }
 0xc4b   :  { %v934_v0 = vmul.f32 %v1134_v33, %v931_v29 }
 0xc4d   :  { %v812_v47 = vld [vmem:[#allocation2 + $0x38] sm:$0xff]  ;;  %v935_v5 = vsub.f32 %v933_v27, %v934_v0 }
 0xc4e   :  { %v816_v51 = vpack.c.bf16 %v812_v47, %v811_v54  ;;  %v1157_v54 = vld [vmem:[%s1728_s5] sm:$0xff] }
 0xc4f   :  { %v936_v34 = vsub.f32 %v935_v5, %v931_v29  ;;  %v948_v17 = vmul.f32 %v935_v5, %v1641_v13  ;;  %1030 = vmatpush.bf16.msrb.mxu2 %v1157_v54 }
 0xc50   :  { %1131 = vmatmul.msk.bf16.gmra.mxu0 %vm136_vm2, %v816_v51 }
 0xc51   :  { %vm937_vm8 = vcmp.gt.f32.partialorder %v936_v34, 0.0  ;;  %v949_v41 = vadd.f32 %v948_v17, %v862_v58 }
 0xc52   :  { %v1135_v22 = vsel %vm937_vm8, 1.0, %v1171_v52 }
 0xc53   :  { %v941_v37 = vmul.f32 %v1135_v22, %v1626_v39  ;;  %v944_v21 = vmul.f32 %v1135_v22, %v1635_v4 }
 0xc55   :  { %v942_v36 = vadd.f32 %v941_v37, %v940_v32  ;;  %v945_v31 = vadd.f32 %v944_v21, %v943_v26 }
 0xc57   :  { %v946_v25 = vadd.f32 0.01, %v942_v36  ;;  %v956_v15 = vmul.f32 %v942_v36, %v1624_v62  ;;  %v959_v9 = vmul.f32 %v945_v31, %v1633_v59 }
 0xc59   :  { %v947_v20 = vadd.f32 %v946_v25, %v945_v31 }
 0xc5b   :  { %v950_v42 = vmul.f32 %v1135_v22, %v947_v20 }
 0xc5d   :  { %v951_v43 = vsub.f32 %v949_v41, %v950_v42 }
 0xc5f   :  { %v952_v44 = vsub.f32 %v951_v43, %v947_v20  ;;  %v964_v24 = vmul.f32 %v951_v43, %v1641_v13 }
 0xc61   :  { %vm953_vm9 = vcmp.gt.f32.partialorder %v952_v44, 0.0  ;;  %v965_v8 = vadd.f32 %v964_v24, %v864_v6 }
 0xc62   :  { %v1136_v46 = vsel %vm953_vm9, 1.0, %v1171_v52 }
 0xc63   :  { %v957_v63 = vmul.f32 %v1136_v46, %v1626_v39  ;;  %v960_v1 = vmul.f32 %v1136_v46, %v1635_v4 }
 0xc65   :  { %v958_v48 = vadd.f32 %v957_v63, %v956_v15  ;;  %v961_v10 = vadd.f32 %v960_v1, %v959_v9 }
 0xc67   :  { %v962_v50 = vadd.f32 0.01, %v958_v48  ;;  %v972_v12 = vmul.f32 %v958_v48, %v1624_v62  ;;  %v975_v51 = vmul.f32 %v961_v10, %v1633_v59 }
 0xc69   :  { %v963_v28 = vadd.f32 %v962_v50, %v961_v10 }
 0xc6b   :  { %v966_v61 = vmul.f32 %v1136_v46, %v963_v28 }
 0xc6d   :  { %v967_v11 = vsub.f32 %v965_v8, %v966_v61 }
 0xc6f   :  { %v968_v19 = vsub.f32 %v967_v11, %v963_v28  ;;  %v980_v40 = vmul.f32 %v967_v11, %v1641_v13 }
 0xc71   :  { %vm969_vm10 = vcmp.gt.f32.partialorder %v968_v19, 0.0 }
 0xc72   :  { %v1137_v38 = vsel %vm969_vm10, 1.0, %v1171_v52 }
 0xc73   :  { %v973_v18 = vmul.f32 %v1137_v38, %v1626_v39  ;;  %v976_v47 = vmul.f32 %v1137_v38, %v1635_v4 }
 0xc75   :  { %v974_v56 = vadd.f32 %v973_v18, %v972_v12  ;;  %v977_v33 = vadd.f32 %v976_v47, %v975_v51 }
 0xc77   :  { %v978_v7 = vadd.f32 0.01, %v974_v56  ;;  %v988_v0 = vmul.f32 %v974_v56, %v1624_v62  ;;  %v991_v34 = vmul.f32 %v977_v33, %v1633_v59  ;;  %v1164_v62 = vld [vmem:[%s1727_s6] ss:$0 sm:$0xff] }
 0xc79   :  { %v979_v57 = vadd.f32 %v978_v7, %v977_v33 }
 0xc7b   :  { %v982_v35 = vmul.f32 %v1137_v38, %v979_v57 }
 0xccd   :  { %v866_v45 = vpop.f32.mrf.mxu0 }
 0xcce   :  { %v867_v49 = vadd.f32 %v866_v45, %v1639_v3 }
 0xcd0   :  { %v981_v14 = vadd.f32 %v980_v40, %v867_v49 }
 0xcd2   :  { %v983_v16 = vsub.f32 %v981_v14, %v982_v35 }
 0xcd4   :  { %v984_v29 = vsub.f32 %v983_v16, %v979_v57  ;;  %v996_v21 = vmul.f32 %v983_v16, %v1641_v13 }
 0xcd5   :  { %v868_v27 = vpop.f32.mrf.mxu0 }
 0xcd6   :  { %vm985_vm11 = vcmp.gt.f32.partialorder %v984_v29, 0.0  ;;  %v869_v22 = vadd.f32 %v868_v27, %v1639_v3 }
 0xcd7   :  { %v1138_v23 = vsel %vm985_vm11, 1.0, %v1171_v52 }
 0xcd8   :  { %v989_v53 = vmul.f32 %v1138_v23, %v1626_v39  ;;  %v992_v60 = vmul.f32 %v1138_v23, %v1635_v4  ;;  %v997_v26 = vadd.f32 %v996_v21, %v869_v22 }
 0xcda   :  { %v990_v5 = vadd.f32 %v989_v53, %v988_v0  ;;  %v993_v37 = vadd.f32 %v992_v60, %v991_v34 }
 0xcdc   :  { %v994_v32 = vadd.f32 0.01, %v990_v5 }
 0xcde   :  { %v995_v36 = vadd.f32 %v994_v32, %v993_v37 }
 0xce0   :  { %v998_v25 = vmul.f32 %v1138_v23, %v995_v36 }
 0xce2   :  { %v999_v31 = vsub.f32 %v997_v26, %v998_v25 }
 0xce4   :  { %v1000_v20 = vsub.f32 %v999_v31, %v995_v36 }
 0xce6   :  { %vm1001_vm12 = vcmp.gt.f32.partialorder %v1000_v20, 0.0 }
 0xce7   :  { %v1139_v39 = vsel %vm1001_vm12, 1.0, %v1171_v52 }
 0xce8   :  { %v1004_v4 = vpack.c.bf16 %v1139_v39, %v1139_v39 }
 0xcea   :  { %1148 = vmatmul.msk.bf16.vlgmr.msrb.gmra.mxu2 %vm136_vm2, %v1004_v4 }
 0xd6d   :  { %v1032_v59 = vpop.f32.mrf.mxu2 }
 0xd6e   :  { %v1033_v3 = vadd.f32 %v1164_v62, %v1032_v59 }
 0xd70   :  { %v1036_v30 = vsub.f32 0.0, %v1033_v3 }
 0xd72   :  { %v1037_v17 = vmul.f32 1.442695, %v1036_v30 }
 0xd74   :  { %1165 = vpow2.f32 %v1037_v17 }
 0xd75   :  { %v1034_v13 = vpop.f32.mrf.mxu2 }
 0xd7a   :  { %v1166_v58 = vpop.eup %1165 }
 0xd7b   :  { %v1039_v42 = vadd.f32 1.0, %v1166_v58 }
 0xd7d   :  { %1167 = vrcp.f32 %v1039_v42  ;;  %v1051_v52 = vand.u32 2147483648, %v1039_v42  ;;  %v1049_v63 = vand.u32 2147483647, %v1039_v42  ;;  %vm1045_vm2 = vweird.f32 %v1039_v42 }
 0xd7f   :  { %v1052_v48 = vor.u32 1.1754944e-38, %v1051_v52  ;;  %vm1050_vm15 = vcmp.eq.f32.partialorder %v1049_v63, 8.507059e+37 }
 0xd83   :  { %v1168_v41 = vpop.eup %1167 }
 0xd84   :  { %v1041_v43 = vmul.f32 %v1168_v41, %v1039_v42  ;;  %vm1046_vm13 = vweird.f32 %v1168_v41 }
 0xd85   :  { %vm1047_vm14 = vmor %vm1045_vm2, %vm1046_vm13 }
 0xd86   :  { %v1042_v44 = vsub.f32 1.0, %v1041_v43 }
 0xd88   :  { %v1043_v46 = vmul.f32 %v1168_v41, %v1042_v44 }
 0xd8a   :  { %v1044_v15 = vadd.f32 %v1168_v41, %v1043_v46 }
 0xd8c   :  { %v1048_v1 = vsel %vm1047_vm14, %v1168_v41, %v1044_v15 }
 0xd8d   :  { %v1053_v9 = vsel %vm1050_vm15, %v1052_v48, %v1048_v1 }
 0xd8e   :  { %1055 = vst [vmem:[%s1729_s13] sm:$0xff] %v1053_v9 }

</bundles_post_ra>
